<compile_context>
chip_gen: v5e
topology: v5e:2x2
jax: 0.10.0
libtpu: 0.0.40
codegen_flags: <defaults>
</compile_context>

<pallas_src>
import functools

import jax
import jax.numpy as jnp
from jax import lax
from jax.experimental import pallas as pl
from jax.experimental.pallas import tpu as pltpu

LAYERS = [4, 80, 80, 80, 80, 80, 80, 1]   # from the PINNs Burgers inverse script
PAD = 128                                 # lane-padded hidden width
DIN_PAD = 8                               # sublane-padded input width


def mlp_kernel(x_ref, w0_ref, wh_ref, wl_ref, b_ref, o_ref):
    """Fused (Linear -> Tanh) x 6 -> Linear on one batch tile.

    x_ref  : (tm, DIN_PAD)   bf16 input tile (features zero-padded 4 -> 8)
    w0_ref : (DIN_PAD, PAD)  bf16 first-layer weight, zero-padded, resident
    wh_ref : (L-2, PAD, PAD) bf16 hidden-layer weights, zero-padded, resident
    wl_ref : (1, PAD)        bf16 TRANSPOSED final weight row, zero-padded
    b_ref  : (L, PAD)        f32 biases, zero-padded, resident
    o_ref  : (1, tm)         f32 lane-dense output tile (batch on lane axis)
    """
    n_hidden = wh_ref.shape[0]

    # Layer 0: (tm, 8) @ (8, PAD) on the MXU; bias-add + tanh in f32.
    h = jnp.dot(x_ref[...], w0_ref[...], preferred_element_type=jnp.float32)
    h = jnp.tanh(h + b_ref[0:1, :])

    # Hidden layers: clean (tm, PAD) x (PAD, PAD) bf16 MXU tiles, f32 accumulate.
    for li in range(n_hidden):
        h = jnp.dot(h.astype(jnp.bfloat16), wh_ref[li],
                    preferred_element_type=jnp.float32)
        h = jnp.tanh(h + b_ref[li + 1:li + 2, :])

    # Final layer: contract the transposed (1, PAD) weight row against
    # h (tm, PAD) along the PAD axis -> (1, tm).  This is already the
    # lane-dense output layout: no padded 128-wide matmul, no XLU transpose.
    out = lax.dot_general(
        wl_ref[...], h.astype(jnp.bfloat16),
        dimension_numbers=(((1,), (1,)), ((), ())),
        preferred_element_type=jnp.float32)
    out = out + b_ref[n_hidden + 1:n_hidden + 2, 0:1]   # scalar output bias
    o_ref[...] = out.astype(o_ref.dtype)


def pack_params(weights, biases):
    """Zero-pad + pack parameters: bf16 matmul operands, f32 biases."""
    assert weights[-1].shape[1] == 1, "kernel assumes a scalar output head"
    w0 = weights[0].astype(jnp.bfloat16)                         # (din, h0)
    w0_p = jnp.pad(w0, ((0, DIN_PAD - w0.shape[0]), (0, PAD - w0.shape[1])))
    wh_p = jnp.stack([
        jnp.pad(w.astype(jnp.bfloat16),
                ((0, PAD - w.shape[0]), (0, PAD - w.shape[1])))
        for w in weights[1:-1]])                                 # (L-2, PAD, PAD)
    wl = weights[-1].astype(jnp.bfloat16).T                      # (1, h_last)
    wl_p = jnp.pad(wl, ((0, 0), (0, PAD - wl.shape[1])))         # (1, PAD)
    b_p = jnp.stack([jnp.pad(b.astype(jnp.float32), (0, PAD - b.shape[0]))
                     for b in biases])                           # (L, PAD)
    return w0_p, wh_p, wl_p, b_p


@functools.partial(jax.jit, static_argnames=("tm",))
def dnn_forward(x, weights, biases, *, tm=512):
    """Pallas wrapper: tiles the batch; each grid step runs the full MLP.

    tm is tunable; keep n_tiles >= 2 (and ideally even) so both v7x
    TensorCores get work.  VMEM use is tiny (<3 MiB) for any sane tm.
    """
    N, din = x.shape
    n_layers = len(weights)
    dout = weights[-1].shape[1]
    assert dout == 1, "kernel emits a single lane-dense output column"
    assert din <= DIN_PAD

    w0_p, wh_p, wl_p, b_p = pack_params(weights, biases)

    # Pad batch so any N works, and features 4 -> 8; padded rows/cols are zero.
    n_tiles = pl.cdiv(N, tm)
    n_pad = n_tiles * tm
    x_p = jnp.pad(x, ((0, n_pad - N), (0, DIN_PAD - din))).astype(jnp.bfloat16)

    resident = dict(pipeline_mode=pl.Buffered(1))   # constant index_map params
    in_specs = [
        pl.BlockSpec((tm, DIN_PAD), lambda i: (i, 0)),                 # batch tile
        pl.BlockSpec((DIN_PAD, PAD), lambda i: (0, 0), **resident),    # W0
        pl.BlockSpec((n_layers - 2, PAD, PAD),
                     lambda i: (0, 0, 0), **resident),                 # hidden Ws
        pl.BlockSpec((1, PAD), lambda i: (0, 0), **resident),          # W_last^T
        pl.BlockSpec((n_layers, PAD), lambda i: (0, 0), **resident),   # biases
    ]
    out_spec = pl.BlockSpec((1, tm), lambda i: (0, i))   # lane-dense output slab

    out = pl.pallas_call(
        mlp_kernel,
        out_shape=jax.ShapeDtypeStruct((1, n_pad), jnp.float32),
        grid_spec=pltpu.PrefetchScalarGridSpec(
            num_scalar_prefetch=0,
            grid=(n_tiles,),
            in_specs=in_specs,
            out_specs=out_spec,
        ),
        compiler_params=pltpu.CompilerParams(
            dimension_semantics=("parallel",)),
    )(x_p, w0_p, wh_p, wl_p, b_p)

    # (1, n_pad) lane-dense slab -> (N, 1) column, dropping batch padding.
    return out.reshape(n_pad, dout)[:N].astype(x.dtype)


def init_params(key, layers):
    """Deterministic PyTorch-Linear-style init: U(-1/sqrt(fan_in), 1/sqrt(fan_in))."""
    weights, biases = [], []
    for i in range(len(layers) - 1):
        fan_in, fan_out = layers[i], layers[i + 1]
        key, kw, kb = jax.random.split(key, 3)
        bound = 1.0 / float(jnp.sqrt(jnp.float32(fan_in)))
        w = jax.random.uniform(kw, (fan_in, fan_out), jnp.float32, -bound, bound)
        b = jax.random.uniform(kb, (fan_out,), jnp.float32, -bound, bound)
        weights.append(w)
        biases.append(b)
    return weights, biases


def dnn_reference(x, weights, biases, matmul_dtype=jnp.float32):
    """Plain-JAX reference; matmul_dtype=bfloat16 mirrors the kernel's MXU path."""
    h = x
    n = len(weights)
    for li, (w, b) in enumerate(zip(weights, biases)):
        h = jnp.dot(h.astype(matmul_dtype), w.astype(matmul_dtype),
                    preferred_element_type=jnp.float32) + b
        if li < n - 1:
            h = jnp.tanh(h)
    return h


if __name__ == "__main__":
    key = jax.random.PRNGKey(0)
    key, kx = jax.random.split(key)

    # Non-multiple-of-tile batch to exercise the padded-tail path; tm=512 gives
    # 2 (even) grid tiles so both v7x TensorCores get work.
    N = 1000
    x = jax.random.uniform(kx, (N, LAYERS[0]), jnp.float32, -1.0, 1.0)

    weights, biases = init_params(key, LAYERS)

    out = dnn_forward(x, weights, biases, tm=512)
    out = jax.block_until_ready(out)
    assert out.shape == (N, 1)

    # Tight check vs. a reference that mirrors the kernel's bf16-operand /
    # f32-accumulate matmuls.
    ref_bf16 = dnn_reference(x, weights, biases, matmul_dtype=jnp.bfloat16)
    assert jnp.allclose(out, ref_bf16, atol=1e-3, rtol=1e-3), \
        "mismatch vs bf16-matmul reference"

    # Loose check vs. the full-f32 reference bounds the bf16-matmul error.
    ref_f32 = dnn_reference(x, weights, biases)
    assert jnp.allclose(out, ref_f32, atol=5e-2, rtol=5e-2), \
        "mismatch vs f32 reference"

    print("KERNEL_OK")
</pallas_src>

<mosaic_0001>
module attributes {stable_mosaic.version = 11 : i64} {
  func.func @mlp_kernel(%arg0: i32, %arg1: memref<512x8xbf16, #tpu.memory_space<vmem>>, %arg2: memref<8x128xbf16, #tpu.memory_space<vmem>>, %arg3: memref<5x128x128xbf16, #tpu.memory_space<vmem>>, %arg4: memref<1x128xbf16, #tpu.memory_space<vmem>>, %arg5: memref<7x128xf32, #tpu.memory_space<vmem>>, %arg6: memref<1x512xf32, #tpu.memory_space<vmem>>) attributes {dimension_semantics = [#tpu.dimension_semantics<parallel>], iteration_bounds = array<i64: 2>, scalar_prefetch = 0 : i64, scratch_operands = 0 : i64, tpu.core_type = #tpu.core_type<tc>, window_params = [{transform_indices = @transform_0, window_bounds = array<i64: 512, 8>}, {pipeline_mode = #tpu.pipeline_mode<synchronous>, transform_indices = @transform_1, window_bounds = array<i64: 8, 128>}, {pipeline_mode = #tpu.pipeline_mode<synchronous>, transform_indices = @transform_2, window_bounds = array<i64: 5, 128, 128>}, {pipeline_mode = #tpu.pipeline_mode<synchronous>, transform_indices = @transform_3, window_bounds = array<i64: 1, 128>}, {pipeline_mode = #tpu.pipeline_mode<synchronous>, transform_indices = @transform_4, window_bounds = array<i64: 7, 128>}, {transform_indices = @transform_5, window_bounds = array<i64: 1, 512>}]} {
    %c0 = arith.constant 0 : index
    %c0_0 = arith.constant 0 : index
    %0 = vector.load %arg1[%c0, %c0_0] : memref<512x8xbf16, #tpu.memory_space<vmem>>, vector<512x8xbf16>
    %c0_1 = arith.constant 0 : index
    %c0_2 = arith.constant 0 : index
    %1 = vector.load %arg2[%c0_1, %c0_2] : memref<8x128xbf16, #tpu.memory_space<vmem>>, vector<8x128xbf16>
    %cst = arith.constant dense<0.000000e+00> : vector<512x128xf32>
    %2 = tpu.matmul %0, %1, %cst {dimension_numbers = #tpu.dot_dimension_numbers<[1], [0], [0], [1], [0, 0, 1, 1], [], []>} : vector<512x8xbf16>, vector<8x128xbf16>, vector<512x128xf32> -> vector<512x128xf32>
    %c0_3 = arith.constant 0 : index
    %c0_4 = arith.constant 0 : index
    %3 = vector.load %arg5[%c0_3, %c0_4] : memref<7x128xf32, #tpu.memory_space<vmem>>, vector<1x128xf32>
    %4 = vector.broadcast %3 : vector<1x128xf32> to vector<512x128xf32>
    %5 = arith.addf %2, %4 : vector<512x128xf32>
    %6 = math.tanh %5 : vector<512x128xf32>
    %7 = arith.truncf %6 : vector<512x128xf32> to vector<512x128xbf16>
    %c0_5 = arith.constant 0 : index
    %c0_6 = arith.constant 0 : index
    %c0_7 = arith.constant 0 : index
    %8 = vector.load %arg3[%c0_5, %c0_6, %c0_7] : memref<5x128x128xbf16, #tpu.memory_space<vmem>>, vector<1x128x128xbf16>
    %9 = vector.shape_cast %8 : vector<1x128x128xbf16> to vector<128x128xbf16>
    %cst_8 = arith.constant dense<0.000000e+00> : vector<512x128xf32>
    %10 = tpu.matmul %7, %9, %cst_8 {dimension_numbers = #tpu.dot_dimension_numbers<[1], [0], [0], [1], [0, 0, 1, 1], [], []>} : vector<512x128xbf16>, vector<128x128xbf16>, vector<512x128xf32> -> vector<512x128xf32>
    %c1 = arith.constant 1 : index
    %c0_9 = arith.constant 0 : index
    %11 = vector.load %arg5[%c1, %c0_9] : memref<7x128xf32, #tpu.memory_space<vmem>>, vector<1x128xf32>
    %12 = vector.broadcast %11 : vector<1x128xf32> to vector<512x128xf32>
    %13 = arith.addf %10, %12 : vector<512x128xf32>
    %14 = math.tanh %13 : vector<512x128xf32>
    %15 = arith.truncf %14 : vector<512x128xf32> to vector<512x128xbf16>
    %c1_10 = arith.constant 1 : index
    %c0_11 = arith.constant 0 : index
    %c0_12 = arith.constant 0 : index
    %16 = vector.load %arg3[%c1_10, %c0_11, %c0_12] : memref<5x128x128xbf16, #tpu.memory_space<vmem>>, vector<1x128x128xbf16>
    %17 = vector.shape_cast %16 : vector<1x128x128xbf16> to vector<128x128xbf16>
    %cst_13 = arith.constant dense<0.000000e+00> : vector<512x128xf32>
    %18 = tpu.matmul %15, %17, %cst_13 {dimension_numbers = #tpu.dot_dimension_numbers<[1], [0], [0], [1], [0, 0, 1, 1], [], []>} : vector<512x128xbf16>, vector<128x128xbf16>, vector<512x128xf32> -> vector<512x128xf32>
    %c2 = arith.constant 2 : index
    %c0_14 = arith.constant 0 : index
    %19 = vector.load %arg5[%c2, %c0_14] : memref<7x128xf32, #tpu.memory_space<vmem>>, vector<1x128xf32>
    %20 = vector.broadcast %19 : vector<1x128xf32> to vector<512x128xf32>
    %21 = arith.addf %18, %20 : vector<512x128xf32>
    %22 = math.tanh %21 : vector<512x128xf32>
    %23 = arith.truncf %22 : vector<512x128xf32> to vector<512x128xbf16>
    %c2_15 = arith.constant 2 : index
    %c0_16 = arith.constant 0 : index
    %c0_17 = arith.constant 0 : index
    %24 = vector.load %arg3[%c2_15, %c0_16, %c0_17] : memref<5x128x128xbf16, #tpu.memory_space<vmem>>, vector<1x128x128xbf16>
    %25 = vector.shape_cast %24 : vector<1x128x128xbf16> to vector<128x128xbf16>
    %cst_18 = arith.constant dense<0.000000e+00> : vector<512x128xf32>
    %26 = tpu.matmul %23, %25, %cst_18 {dimension_numbers = #tpu.dot_dimension_numbers<[1], [0], [0], [1], [0, 0, 1, 1], [], []>} : vector<512x128xbf16>, vector<128x128xbf16>, vector<512x128xf32> -> vector<512x128xf32>
    %c3 = arith.constant 3 : index
    %c0_19 = arith.constant 0 : index
    %27 = vector.load %arg5[%c3, %c0_19] : memref<7x128xf32, #tpu.memory_space<vmem>>, vector<1x128xf32>
    %28 = vector.broadcast %27 : vector<1x128xf32> to vector<512x128xf32>
    %29 = arith.addf %26, %28 : vector<512x128xf32>
    %30 = math.tanh %29 : vector<512x128xf32>
    %31 = arith.truncf %30 : vector<512x128xf32> to vector<512x128xbf16>
    %c3_20 = arith.constant 3 : index
    %c0_21 = arith.constant 0 : index
    %c0_22 = arith.constant 0 : index
    %32 = vector.load %arg3[%c3_20, %c0_21, %c0_22] : memref<5x128x128xbf16, #tpu.memory_space<vmem>>, vector<1x128x128xbf16>
    %33 = vector.shape_cast %32 : vector<1x128x128xbf16> to vector<128x128xbf16>
    %cst_23 = arith.constant dense<0.000000e+00> : vector<512x128xf32>
    %34 = tpu.matmul %31, %33, %cst_23 {dimension_numbers = #tpu.dot_dimension_numbers<[1], [0], [0], [1], [0, 0, 1, 1], [], []>} : vector<512x128xbf16>, vector<128x128xbf16>, vector<512x128xf32> -> vector<512x128xf32>
    %c4 = arith.constant 4 : index
    %c0_24 = arith.constant 0 : index
    %35 = vector.load %arg5[%c4, %c0_24] : memref<7x128xf32, #tpu.memory_space<vmem>>, vector<1x128xf32>
    %36 = vector.broadcast %35 : vector<1x128xf32> to vector<512x128xf32>
    %37 = arith.addf %34, %36 : vector<512x128xf32>
    %38 = math.tanh %37 : vector<512x128xf32>
    %39 = arith.truncf %38 : vector<512x128xf32> to vector<512x128xbf16>
    %c4_25 = arith.constant 4 : index
    %c0_26 = arith.constant 0 : index
    %c0_27 = arith.constant 0 : index
    %40 = vector.load %arg3[%c4_25, %c0_26, %c0_27] : memref<5x128x128xbf16, #tpu.memory_space<vmem>>, vector<1x128x128xbf16>
    %41 = vector.shape_cast %40 : vector<1x128x128xbf16> to vector<128x128xbf16>
    %cst_28 = arith.constant dense<0.000000e+00> : vector<512x128xf32>
    %42 = tpu.matmul %39, %41, %cst_28 {dimension_numbers = #tpu.dot_dimension_numbers<[1], [0], [0], [1], [0, 0, 1, 1], [], []>} : vector<512x128xbf16>, vector<128x128xbf16>, vector<512x128xf32> -> vector<512x128xf32>
    %c5 = arith.constant 5 : index
    %c0_29 = arith.constant 0 : index
    %43 = vector.load %arg5[%c5, %c0_29] : memref<7x128xf32, #tpu.memory_space<vmem>>, vector<1x128xf32>
    %44 = vector.broadcast %43 : vector<1x128xf32> to vector<512x128xf32>
    %45 = arith.addf %42, %44 : vector<512x128xf32>
    %46 = math.tanh %45 : vector<512x128xf32>
    %c0_30 = arith.constant 0 : index
    %c0_31 = arith.constant 0 : index
    %47 = vector.load %arg4[%c0_30, %c0_31] : memref<1x128xbf16, #tpu.memory_space<vmem>>, vector<1x128xbf16>
    %48 = arith.truncf %46 : vector<512x128xf32> to vector<512x128xbf16>
    %cst_32 = arith.constant dense<0.000000e+00> : vector<1x512xf32>
    %49 = tpu.matmul %47, %48, %cst_32 {dimension_numbers = #tpu.dot_dimension_numbers<[1], [1], [0], [0], [0, 0, 1, 0], [], []>} : vector<1x128xbf16>, vector<512x128xbf16>, vector<1x512xf32> -> vector<1x512xf32>
    %c6 = arith.constant 6 : index
    %c0_33 = arith.constant 0 : index
    %50 = vector.load %arg5[%c6, %c0_33] : memref<7x128xf32, #tpu.memory_space<vmem>>, vector<1x1xf32>
    %51 = vector.broadcast %50 : vector<1x1xf32> to vector<1x512xf32>
    %52 = arith.addf %49, %51 : vector<1x512xf32>
    %c0_34 = arith.constant 0 : index
    %c0_35 = arith.constant 0 : index
    %53 = vector.load %arg6[%c0_34, %c0_35] : memref<1x512xf32, #tpu.memory_space<vmem>>, vector<1x512xf32>
    tpu.vector_store %arg6[%c0_34, %c0_35], %52 {strides = array<i32>} : memref<1x512xf32, #tpu.memory_space<vmem>>, vector<1x512xf32>,
    return
  }
  func.func @transform_0(%arg0: i32) -> (i32, i32) {
    %c0_i32 = arith.constant 0 : i32
    %c0_i32_0 = arith.constant 0 : i32
    return %arg0, %c0_i32 : i32, i32
  }
  func.func @transform_1(%arg0: i32) -> (i32, i32) {
    %c0_i32 = arith.constant 0 : i32
    %c0_i32_0 = arith.constant 0 : i32
    %c0_i32_1 = arith.constant 0 : i32
    return %c0_i32, %c0_i32_0 : i32, i32
  }
  func.func @transform_2(%arg0: i32) -> (i32, i32, i32) {
    %c0_i32 = arith.constant 0 : i32
    %c0_i32_0 = arith.constant 0 : i32
    %c0_i32_1 = arith.constant 0 : i32
    %c0_i32_2 = arith.constant 0 : i32
    return %c0_i32, %c0_i32_0, %c0_i32_1 : i32, i32, i32
  }
  func.func @transform_3(%arg0: i32) -> (i32, i32) {
    %c0_i32 = arith.constant 0 : i32
    %c0_i32_0 = arith.constant 0 : i32
    %c0_i32_1 = arith.constant 0 : i32
    return %c0_i32, %c0_i32_0 : i32, i32
  }
  func.func @transform_4(%arg0: i32) -> (i32, i32) {
    %c0_i32 = arith.constant 0 : i32
    %c0_i32_0 = arith.constant 0 : i32
    %c0_i32_1 = arith.constant 0 : i32
    return %c0_i32, %c0_i32_0 : i32, i32
  }
  func.func @transform_5(%arg0: i32) -> (i32, i32) {
    %c0_i32 = arith.constant 0 : i32
    %c0_i32_0 = arith.constant 0 : i32
    return %c0_i32, %arg0 : i32, i32
  }
}

</mosaic_0001>

<bundles_post_ra>
// kernel: dnn_forward.1
= control target key start
LH: loop header
LB: loop body
LE: loop exit
PB: predicated region body
PF: predicated region fallthrough
CT: control target
= control target key end

     0   :  { %s3910_s18 = smov 0   ;;  %s4916_s0 = inlined_call_operand.vmem [shape: bf16[1024,8], index: 0, kind: input, shape index: {}]   ;;  %s4917_s1 = inlined_call_operand.vmem [shape: bf16[8,128], index: 1, kind: input, shape index: {}]   ;;  %s4918_s2 = inlined_call_operand.vmem [shape: bf16[5,128,128], index: 2, kind: input, shape index: {}]   ;;  %s4919_s3 = inlined_call_operand.vmem [shape: bf16[1,128], index: 3, kind: input, shape index: {}]   ;;  %s4920_s4 = inlined_call_operand.vmem [shape: f32[7,128], index: 4, kind: input, shape index: {}]   ;;  %s4921_s5 = inlined_call_operand.vmem [shape: f32[1,1024], index: 5, kind: output, shape index: {}]  }
   0x1 LB: > { %s2607_s19 = sadd.s32 4294967295, %s3877_s18   ;;  %p2611_p0 = scmp.ge.s32.totalorder %s3877_s18, 1  ;;  %s3877_s18 = sphi %s3910_s18, %s15_s18  }
   0x2   : > { %p188_p1 = scmp.lt.s32.totalorder %s3877_s18, 3 }
   0x4   : > { %p189_p2 = pnand %p2611_p0, %p188_p1 }
   0x5   : > { %s2612_s22 = sshll.u32 (!%p189_p2), %s2607_s19, 6  ;;  %s2614_s16 = sshll.u32 (!%p189_p2), %s2607_s19, 2 }
   0x6   : > { %192 = sbr.rel (%p189_p2) target bundleno = 1965 (0x7ad), region = 40  ;;  %p216_p3 = scmp.lt.s32.totalorder (!%p189_p2), %s2612_s22, 127 }
   0x7   : > { %p222_p4 = scmp.lt.s32.totalorder (!%p189_p2), %s2614_s16, 7 }
   0xb   : > { %v291_v0 = vld [vmem:[%s4917_s1] sm:$0xf]  ;;  %vm551_vm0 = vcmask 1043456   ;;  %s4923_s22 = smov (!%p216_p3, %s2612_s22), 127  ;;  %vm454_vm1 = vcmask 64512   ;;  %v3040_v8 = vld [vmem:[%s4918_s2 + $0x38] sm:$0xff] }
   0xc   : > { %v553_v1 = vsel %vm551_vm0, %v291_v0, 0  ;;  %s2613_s23 = sshll.u32 %s4923_s22, 2  ;;  %886 = vmatpush.bf16.msra.mxu1 %v3040_v8  ;;  %v3039_v9 = vld [vmem:[%s4918_s2 + $0x30] sm:$0xff]  ;;  %3074 = vmatpush.bf16.msra.mxu2 %v3040_v8  ;;  %v3038_v10 = vld [vmem:[%s4918_s2 + $0x28] sm:$0xff]  ;;  %v3037_v12 = vld [vmem:[%s4918_s2 + $0x20] sm:$0xff]  ;;  %s4925_s16 = smov (!%p222_p4, %s2614_s16), 7 }
   0xd   : > { %562 = vmatpush.bf16.msra.mxu0 %v553_v1  ;;  %3073 = vmatpush.bf16.msra.mxu3 %v553_v1  ;;  %s3926_s26 = scalar_lea.vmem %s4916_s0, %s2613_s23  ;;  %v3036_v13 = vld [vmem:[%s4918_s2 + $0x18] sm:$0xff]  ;;  %v3035_v14 = vld [vmem:[%s4918_s2 + $0x10] sm:$0xff]  ;;  %v3034_v15 = vld [vmem:[%s4918_s2 + $0x8] sm:$0xff]  ;;  %vm2545_vm2 = vcmask 1040384   ;;  %vm2547_vm3 = vcmask 1042434   ;;  %vm2549_vm4 = vcmask 1041408   ;;  %s224_s21 = scalar_lea.vmem %s4921_s5, %s4925_s16 }
   0xe   : > { %v3001_v2 = vld [vmem:[%s3926_s26] sm:$0xff]  ;;  %v3002_v3 = vld [vmem:[%s3926_s26 + $0x8] sm:$0xff]  ;;  %v3003_v4 = vld [vmem:[%s3926_s26 + $0x10] sm:$0xff] }
   0xf   : > { %v3004_v5 = vld [vmem:[%s3926_s26 + $0x18] sm:$0xff]  ;;  %v3005_v6 = vld [vmem:[%s3926_s26 + $0x20] sm:$0xff]  ;;  %v3006_v7 = vld [vmem:[%s3926_s26 + $0x28] sm:$0xff] }
  0x10   : > { %2743 = vmatmul.msk.bf16.vlgmr.msra.gmra.mxu0 %vm454_vm1, %v3001_v2  ;;  %887 = vmatpush.bf16.msra.mxu1 %v3039_v9  ;;  %v3007_v11 = vld [vmem:[%s3926_s26 + $0x30] sm:$0xff]  ;;  %v3008_v16 = vld [vmem:[%s3926_s26 + $0x38] sm:$0xff]  ;;  %v3033_v17 = vld [vmem:[%s4918_s2] sm:$0xff] }
  0x11   : > { %3075 = vmatpush.bf16.msra.mxu2 %v3039_v9  ;;  %v3009_v18 = vld [vmem:[%s3926_s26 + $0x40] sm:$0xff]  ;;  %v3010_v24 = vld [vmem:[%s3926_s26 + $0x48] sm:$0xff]  ;;  %v3011_v32 = vld [vmem:[%s3926_s26 + $0x50] sm:$0xff] }
  0x12   : > { %v3972_v20 = vld [vmem:[%s4920_s4] ss:$0 sm:$0xff]  ;;  %v3012_v40 = vld [vmem:[%s3926_s26 + $0x58] sm:$0xff]  ;;  %v3014_v56 = vld [vmem:[%s3926_s26 + $0x68] sm:$0xff] }
  0x13   : > { %v3013_v48 = vld [vmem:[%s3926_s26 + $0x60] sm:$0xff]  ;;  %v3015_v0 = vld [vmem:[%s3926_s26 + $0x70] sm:$0xff]  ;;  %v3016_v8 = vld [vmem:[%s3926_s26 + $0x78] sm:$0xff] }
  0x14   : > { %888 = vmatpush.bf16.msra.mxu1 %v3038_v10 }
  0x15   : > { %3076 = vmatpush.bf16.msra.mxu2 %v3038_v10 }
  0x18   : > { %889 = vmatpush.bf16.msra.mxu1 %v3037_v12 }
  0x19   : > { %3077 = vmatpush.bf16.msra.mxu2 %v3037_v12 }
  0x1c   : > { %890 = vmatpush.bf16.msra.mxu1 %v3036_v13 }
  0x1d   : > { %3078 = vmatpush.bf16.msra.mxu2 %v3036_v13 }
  0x20   : > { %2744 = vmatmul.msk.bf16.gmra.mxu0 %vm454_vm1, %v3002_v3  ;;  %891 = vmatpush.bf16.msra.mxu1 %v3035_v14 }
  0x21   : > { %3079 = vmatpush.bf16.msra.mxu2 %v3035_v14 }
  0x24   : > { %892 = vmatpush.bf16.msra.mxu1 %v3034_v15 }
  0x25   : > { %3080 = vmatpush.bf16.msra.mxu2 %v3034_v15 }
  0x28   : > { %893 = vmatpush.bf16.msra.mxu1 %v3033_v17 }
  0x29   : > { %3081 = vmatpush.bf16.msra.mxu2 %v3033_v17 }
  0x30   : > { %2745 = vmatmul.msk.bf16.gmra.mxu0 %vm454_vm1, %v3003_v4 }
  0x40   : > { %2746 = vmatmul.msk.bf16.gmra.mxu0 %vm454_vm1, %v3004_v5 }
  0x50   : > { %2747 = vmatmul.msk.bf16.gmra.mxu0 %vm454_vm1, %v3005_v6 }
  0x60   : > { %2748 = vmatmul.msk.bf16.gmra.mxu0 %vm454_vm1, %v3006_v7 }
  0x70   : > { %2749 = vmatmul.msk.bf16.gmra.mxu0 %vm454_vm1, %v3007_v11 }
  0x80   : > { %2750 = vmatmul.msk.bf16.gmra.mxu0 %vm454_vm1, %v3008_v16  ;;  %v3017_v16 = vld [vmem:[%s3926_s26 + $0x80] sm:$0xff] }
  0x8d   : > { %v564_v19 = vpop.f32.mrf.mxu0 }
  0x8e   : > { %v565_v21 = vadd.f32 %v3972_v20, %v564_v19 }
  0x90   : > { %2751 = vmatmul.msk.bf16.gmra.mxu0 %vm454_vm1, %v3009_v18  ;;  %3098 = vtanh.f32 %v565_v21 }
  0x95   : > { %v566_v22 = vpop.f32.mrf.mxu0 }
  0x96   : > { %v567_v23 = vadd.f32 %v3972_v20, %v566_v22  ;;  %v3099_v25 = vpop.eup %3098 }
  0x98   : > { %3100 = vtanh.f32 %v567_v23 }
  0x9d   : > { %v569_v26 = vpop.f32.mrf.mxu0 }
  0x9e   : > { %v3101_v27 = vpop.eup %3100  ;;  %v570_v29 = vadd.f32 %v3972_v20, %v569_v26 }
  0x9f   : > { %v788_v28 = vpack.c.bf16 %v3101_v27, %v3099_v25  ;;  %v3018_v25 = vld [vmem:[%s3926_s26 + $0x88] sm:$0xff] }
  0xa0   : > { %2752 = vmatmul.msk.bf16.gmra.mxu0 %vm454_vm1, %v3010_v24  ;;  %3102 = vtanh.f32 %v570_v29 }
  0xa1   : > { %894 = vmatmul.bf16.vlgmr.msra.gmra.mxu1 %v788_v28 }
  0xa5   : > { %v571_v30 = vpop.f32.mrf.mxu0 }
  0xa6   : > { %v572_v31 = vadd.f32 %v3972_v20, %v571_v30  ;;  %v3103_v33 = vpop.eup %3102  ;;  %v4013_v30 = vld [vmem:[%s4920_s4 + $0x1] ss:$0 sm:$0xff] }
  0xa8   : > { %3104 = vtanh.f32 %v572_v31 }
  0xad   : > { %v574_v34 = vpop.f32.mrf.mxu0 }
  0xae   : > { %v3105_v35 = vpop.eup %3104  ;;  %v575_v37 = vadd.f32 %v3972_v20, %v574_v34 }
  0xaf   : > { %v789_v36 = vpack.c.bf16 %v3105_v35, %v3103_v33 }
  0xb0   : > { %2753 = vmatmul.msk.bf16.gmra.mxu0 %vm454_vm1, %v3011_v32  ;;  %3106 = vtanh.f32 %v575_v37  ;;  %v3021_v32 = vld [vmem:[%s3926_s26 + $0xa0] sm:$0xff] }
  0xb1   : > { %899 = vmatmul.bf16.gmra.mxu1 %v789_v36  ;;  %2763 = vmatmul.msk.bf16.vlgmr.msra.gmra.mxu3 %vm454_vm1, %v3021_v32 }
  0xb5   : > { %v576_v38 = vpop.f32.mrf.mxu0 }
  0xb6   : > { %v577_v39 = vadd.f32 %v3972_v20, %v576_v38  ;;  %v3107_v41 = vpop.eup %3106 }
  0xb8   : > { %3108 = vtanh.f32 %v577_v39 }
  0xbd   : > { %v579_v42 = vpop.f32.mrf.mxu0 }
  0xbe   : > { %v3109_v43 = vpop.eup %3108  ;;  %v580_v45 = vadd.f32 %v3972_v20, %v579_v42 }
  0xbf   : > { %v790_v44 = vpack.c.bf16 %v3109_v43, %v3107_v41 }
  0xc0   : > { %2754 = vmatmul.msk.bf16.gmra.mxu0 %vm454_vm1, %v3012_v40  ;;  %3110 = vtanh.f32 %v580_v45  ;;  %v3019_v40 = vld [vmem:[%s3926_s26 + $0x90] sm:$0xff] }
  0xc1   : > { %904 = vmatmul.bf16.gmra.mxu1 %v790_v44 }
  0xc5   : > { %v581_v46 = vpop.f32.mrf.mxu0 }
  0xc6   : > { %v582_v47 = vadd.f32 %v3972_v20, %v581_v46  ;;  %v3111_v49 = vpop.eup %3110 }
  0xc8   : > { %3112 = vtanh.f32 %v582_v47  ;;  %v3022_v47 = vld [vmem:[%s3926_s26 + $0xa8] sm:$0xff] }
  0xc9   : > { %2764 = vmatmul.msk.bf16.gmra.mxu3 %vm454_vm1, %v3022_v47 }
  0xcd   : > { %v584_v50 = vpop.f32.mrf.mxu0 }
  0xce   : > { %v3113_v51 = vpop.eup %3112  ;;  %v585_v53 = vadd.f32 %v3972_v20, %v584_v50 }
  0xcf   : > { %v791_v52 = vpack.c.bf16 %v3113_v51, %v3111_v49 }
  0xd0   : > { %2755 = vmatmul.msk.bf16.gmra.mxu0 %vm454_vm1, %v3013_v48  ;;  %3114 = vtanh.f32 %v585_v53 }
  0xd1   : > { %909 = vmatmul.bf16.gmra.mxu1 %v791_v52 }
  0xd5   : > { %v586_v54 = vpop.f32.mrf.mxu0 }
  0xd6   : > { %v587_v55 = vadd.f32 %v3972_v20, %v586_v54  ;;  %v3115_v57 = vpop.eup %3114 }
  0xd8   : > { %3116 = vtanh.f32 %v587_v55 }
  0xdd   : > { %v589_v58 = vpop.f32.mrf.mxu0 }
  0xde   : > { %v3117_v59 = vpop.eup %3116  ;;  %v590_v61 = vadd.f32 %v3972_v20, %v589_v58 }
  0xdf   : > { %v792_v60 = vpack.c.bf16 %v3117_v59, %v3115_v57 }
  0xe0   : > { %2756 = vmatmul.msk.bf16.gmra.mxu0 %vm454_vm1, %v3014_v56  ;;  %3118 = vtanh.f32 %v590_v61  ;;  %v3020_v56 = vld [vmem:[%s3926_s26 + $0x98] sm:$0xff] }
  0xe1   : > { %914 = vmatmul.bf16.gmra.mxu1 %v792_v60 }
  0xe5   : > { %v591_v62 = vpop.f32.mrf.mxu0 }
  0xe6   : > { %v592_v63 = vadd.f32 %v3972_v20, %v591_v62  ;;  %v3119_v1 = vpop.eup %3118 }
  0xe8   : > { %3120 = vtanh.f32 %v592_v63  ;;  %v3023_v63 = vld [vmem:[%s3926_s26 + $0xb0] sm:$0xff] }
  0xe9   : > { %2765 = vmatmul.msk.bf16.gmra.mxu3 %vm454_vm1, %v3023_v63 }
  0xed   : > { %v594_v2 = vpop.f32.mrf.mxu0 }
  0xee   : > { %v3121_v3 = vpop.eup %3120  ;;  %v595_v5 = vadd.f32 %v3972_v20, %v594_v2 }
  0xef   : > { %v793_v4 = vpack.c.bf16 %v3121_v3, %v3119_v1 }
  0xf0   : > { %2757 = vmatmul.msk.bf16.gmra.mxu0 %vm454_vm1, %v3015_v0  ;;  %3122 = vtanh.f32 %v595_v5 }
  0xf1   : > { %919 = vmatmul.bf16.gmra.mxu1 %v793_v4 }
  0xf5   : > { %v596_v6 = vpop.f32.mrf.mxu0 }
  0xf6   : > { %v597_v7 = vadd.f32 %v3972_v20, %v596_v6  ;;  %v3123_v9 = vpop.eup %3122 }
  0xf8   : > { %3124 = vtanh.f32 %v597_v7 }
  0xfd   : > { %v599_v10 = vpop.f32.mrf.mxu0 }
  0xfe   : > { %v3125_v11 = vpop.eup %3124  ;;  %v600_v13 = vadd.f32 %v3972_v20, %v599_v10 }
  0xff   : > { %v794_v12 = vpack.c.bf16 %v3125_v11, %v3123_v9 }
 0x100   : > { %2758 = vmatmul.msk.bf16.gmra.mxu0 %vm454_vm1, %v3016_v8  ;;  %3126 = vtanh.f32 %v600_v13 }
 0x101   : > { %924 = vmatmul.bf16.gmra.mxu1 %v794_v12 }
 0x105   : > { %v601_v14 = vpop.f32.mrf.mxu0 }
 0x106   : > { %v602_v15 = vadd.f32 %v3972_v20, %v601_v14  ;;  %v3127_v17 = vpop.eup %3126  ;;  %v3024_v14 = vld [vmem:[%s3926_s26 + $0xb8] sm:$0xff] }
 0x107   : > { %2766 = vmatmul.msk.bf16.gmra.mxu3 %vm454_vm1, %v3024_v14 }
 0x108   : > { %3128 = vtanh.f32 %v602_v15 }
 0x10d   : > { %v604_v18 = vpop.f32.mrf.mxu0 }
 0x10e   : > { %v3129_v19 = vpop.eup %3128  ;;  %v605_v22 = vadd.f32 %v3972_v20, %v604_v18 }
 0x10f   : > { %v795_v21 = vpack.c.bf16 %v3129_v19, %v3127_v17 }
 0x110   : > { %2759 = vmatmul.msk.bf16.gmra.mxu0 %vm454_vm1, %v3017_v16  ;;  %3130 = vtanh.f32 %v605_v22 }
 0x111   : > { %929 = vmatmul.bf16.gmra.mxu1 %v795_v21 }
 0x115   : > { %v606_v23 = vpop.f32.mrf.mxu0 }
 0x116   : > { %v607_v24 = vadd.f32 %v3972_v20, %v606_v23  ;;  %v3131_v26 = vpop.eup %3130 }
 0x118   : > { %3132 = vtanh.f32 %v607_v24 }
 0x11d   : > { %v609_v27 = vpop.f32.mrf.mxu0 }
 0x11e   : > { %v3133_v28 = vpop.eup %3132  ;;  %v895_v29 = vpop.f32.mrf.mxu1  ;;  %v610_v33 = vadd.f32 %v3972_v20, %v609_v27 }
 0x11f   : > { %v796_v31 = vpack.c.bf16 %v3133_v28, %v3131_v26  ;;  %v896_v34 = vadd.f32 %v4013_v30, %v895_v29 }
 0x120   : > { %2760 = vmatmul.msk.bf16.gmra.mxu0 %vm454_vm1, %v3018_v25  ;;  %3134 = vtanh.f32 %v610_v33 }
 0x121   : > { %934 = vmatmul.bf16.gmra.mxu1 %v796_v31  ;;  %3136 = vtanh.f32 %v896_v34  ;;  %v3025_v31 = vld [vmem:[%s3926_s26 + $0xc0] sm:$0xff] }
 0x122   : > { %2767 = vmatmul.msk.bf16.gmra.mxu3 %vm454_vm1, %v3025_v31 }
 0x125   : > { %v611_v35 = vpop.f32.mrf.mxu0 }
 0x126   : > { %v612_v36 = vadd.f32 %v3972_v20, %v611_v35  ;;  %v897_v37 = vpop.f32.mrf.mxu1  ;;  %v3135_v39 = vpop.eup %3134 }
 0x127   : > { %v898_v38 = vadd.f32 %v4013_v30, %v897_v37  ;;  %v4023_v41 = vpop.eup %3136 }
 0x128   : > { %3138 = vtanh.f32 %v612_v36 }
 0x129   : > { %3140 = vtanh.f32 %v898_v38 }
 0x12d   : > { %v614_v42 = vpop.f32.mrf.mxu0 }
 0x12e   : > { %v3139_v43 = vpop.eup %3138  ;;  %v900_v44 = vpop.f32.mrf.mxu1  ;;  %v615_v49 = vadd.f32 %v3972_v20, %v614_v42 }
 0x12f   : > { %v4025_v45 = vpop.eup %3140  ;;  %v797_v46 = vpack.c.bf16 %v3139_v43, %v3135_v39  ;;  %v901_v50 = vadd.f32 %v4013_v30, %v900_v44 }
 0x130   : > { %2761 = vmatmul.msk.bf16.gmra.mxu0 %vm454_vm1, %v3019_v40  ;;  %v1119_v48 = vpack.c.bf16 %v4025_v45, %v4023_v41  ;;  %3142 = vtanh.f32 %v615_v49  ;;  %v3026_v49 = vld [vmem:[%s3926_s26 + $0xc8] sm:$0xff] }
 0x131   : > { %939 = vmatmul.bf16.gmra.mxu1 %v797_v46  ;;  %3144 = vtanh.f32 %v901_v50 }
 0x132   : > { %2768 = vmatmul.msk.bf16.gmra.mxu3 %vm454_vm1, %v3026_v49  ;;  %v3030_v49 = vld [vmem:[%s3926_s26 + $0xe8] sm:$0xff] }
 0x135   : > { %v616_v51 = vpop.f32.mrf.mxu0 }
 0x136   : > { %v617_v52 = vadd.f32 %v3972_v20, %v616_v51  ;;  %v902_v53 = vpop.f32.mrf.mxu1  ;;  %v3143_v55 = vpop.eup %3142 }
 0x137   : > { %v903_v54 = vadd.f32 %v4013_v30, %v902_v53  ;;  %v4037_v57 = vpop.eup %3144 }
 0x138   : > { %3146 = vtanh.f32 %v617_v52 }
 0x139   : > { %3148 = vtanh.f32 %v903_v54 }
 0x13d   : > { %v619_v58 = vpop.f32.mrf.mxu0 }
 0x13e   : > { %v3147_v59 = vpop.eup %3146  ;;  %v905_v60 = vpop.f32.mrf.mxu1  ;;  %v620_v1 = vadd.f32 %v3972_v20, %v619_v58 }
 0x13f   : > { %v4039_v61 = vpop.eup %3148  ;;  %v798_v62 = vpack.c.bf16 %v3147_v59, %v3143_v55  ;;  %v906_v2 = vadd.f32 %v4013_v30, %v905_v60 }
 0x140   : > { %2762 = vmatmul.msk.bf16.gmra.mxu0 %vm454_vm1, %v3020_v56  ;;  %v1120_v0 = vpack.c.bf16 %v4039_v61, %v4037_v57  ;;  %3150 = vtanh.f32 %v620_v1 }
 0x141   : > { %944 = vmatmul.bf16.gmra.mxu1 %v798_v62  ;;  %3152 = vtanh.f32 %v906_v2 }
 0x145   : > { %v621_v3 = vpop.f32.mrf.mxu0 }
 0x146   : > { %v622_v4 = vadd.f32 %v3972_v20, %v621_v3  ;;  %v907_v5 = vpop.f32.mrf.mxu1  ;;  %v3151_v7 = vpop.eup %3150  ;;  %v3027_v3 = vld [vmem:[%s3926_s26 + $0xd0] sm:$0xff] }
 0x147   : > { %v908_v6 = vadd.f32 %v4013_v30, %v907_v5  ;;  %v4050_v8 = vpop.eup %3152  ;;  %2769 = vmatmul.msk.bf16.gmra.mxu3 %vm454_vm1, %v3027_v3 }
 0x148   : > { %3154 = vtanh.f32 %v622_v4 }
 0x149   : > { %3156 = vtanh.f32 %v908_v6 }
 0x14d   : > { %v624_v9 = vpop.f32.mrf.mxu0 }
 0x14e   : > { %v3155_v10 = vpop.eup %3154  ;;  %v910_v11 = vpop.f32.mrf.mxu1  ;;  %v625_v16 = vadd.f32 %v3972_v20, %v624_v9 }
 0x14f   : > { %v4052_v12 = vpop.eup %3156  ;;  %v799_v13 = vpack.c.bf16 %v3155_v10, %v3151_v7  ;;  %v911_v17 = vadd.f32 %v4013_v30, %v910_v11 }
 0x150   : > { %v1121_v15 = vpack.c.bf16 %v4052_v12, %v4050_v8  ;;  %3158 = vtanh.f32 %v625_v16 }
 0x151   : > { %949 = vmatmul.bf16.gmra.mxu1 %v799_v13  ;;  %3160 = vtanh.f32 %v911_v17 }
 0x155   : > { %v626_v18 = vpop.f32.mrf.mxu0 }
 0x156   : > { %v627_v19 = vadd.f32 %v3972_v20, %v626_v18  ;;  %v912_v21 = vpop.f32.mrf.mxu1  ;;  %v3159_v23 = vpop.eup %3158 }
 0x157   : > { %v913_v22 = vadd.f32 %v4013_v30, %v912_v21  ;;  %v4062_v24 = vpop.eup %3160  ;;  %v3028_v21 = vld [vmem:[%s3926_s26 + $0xd8] sm:$0xff] }
 0x158   : > { %3162 = vtanh.f32 %v627_v19  ;;  %2770 = vmatmul.msk.bf16.gmra.mxu3 %vm454_vm1, %v3028_v21 }
 0x159   : > { %3164 = vtanh.f32 %v913_v22 }
 0x15d   : > { %v629_v25 = vpop.f32.mrf.mxu0 }
 0x15e   : > { %v3163_v26 = vpop.eup %3162  ;;  %v915_v27 = vpop.f32.mrf.mxu1  ;;  %v630_v33 = vadd.f32 %v3972_v20, %v629_v25 }
 0x15f   : > { %v4064_v28 = vpop.eup %3164  ;;  %v800_v29 = vpack.c.bf16 %v3163_v26, %v3159_v23  ;;  %v916_v34 = vadd.f32 %v4013_v30, %v915_v27 }
 0x160   : > { %v1122_v32 = vpack.c.bf16 %v4064_v28, %v4062_v24  ;;  %3166 = vtanh.f32 %v630_v33 }
 0x161   : > { %954 = vmatmul.bf16.gmra.mxu1 %v800_v29  ;;  %3168 = vtanh.f32 %v916_v34  ;;  %v3029_v34 = vld [vmem:[%s3926_s26 + $0xe0] sm:$0xff] }
 0x165   : > { %v631_v35 = vpop.f32.mrf.mxu0 }
 0x166   : > { %v632_v36 = vadd.f32 %v3972_v20, %v631_v35  ;;  %v917_v37 = vpop.f32.mrf.mxu1  ;;  %v3167_v39 = vpop.eup %3166 }
 0x167   : > { %v918_v38 = vadd.f32 %v4013_v30, %v917_v37  ;;  %v4074_v40 = vpop.eup %3168  ;;  %v664_v37 = vpop.f32.mrf.mxu3 }
 0x168   : > { %3170 = vtanh.f32 %v632_v36  ;;  %2771 = vmatmul.msk.bf16.gmra.mxu3 %vm454_vm1, %v3029_v34 }
 0x169   : > { %3172 = vtanh.f32 %v918_v38 }
 0x16d   : > { %v634_v42 = vpop.f32.mrf.mxu0 }
 0x16e   : > { %v3171_v43 = vpop.eup %3170  ;;  %v920_v44 = vpop.f32.mrf.mxu1  ;;  %v635_v51 = vadd.f32 %v3972_v20, %v634_v42 }
 0x16f   : > { %v4076_v46 = vpop.eup %3172  ;;  %v801_v47 = vpack.c.bf16 %v3171_v43, %v3167_v39  ;;  %v921_v52 = vadd.f32 %v4013_v30, %v920_v44  ;;  %v666_v43 = vpop.f32.mrf.mxu3 }
 0x170   : > { %v1123_v50 = vpack.c.bf16 %v4076_v46, %v4074_v40  ;;  %3174 = vtanh.f32 %v635_v51 }
 0x171   : > { %959 = vmatmul.bf16.gmra.mxu1 %v801_v47  ;;  %3176 = vtanh.f32 %v921_v52 }
 0x175   : > { %v636_v53 = vpop.f32.mrf.mxu0 }
 0x176   : > { %v637_v54 = vadd.f32 %v3972_v20, %v636_v53  ;;  %v922_v55 = vpop.f32.mrf.mxu1  ;;  %v3175_v58 = vpop.eup %3174 }
 0x177   : > { %v923_v56 = vadd.f32 %v4013_v30, %v922_v55  ;;  %v4086_v59 = vpop.eup %3176  ;;  %v669_v53 = vpop.f32.mrf.mxu3 }
 0x178   : > { %3178 = vtanh.f32 %v637_v54  ;;  %2772 = vmatmul.msk.bf16.gmra.mxu3 %vm454_vm1, %v3030_v49 }
 0x179   : > { %3180 = vtanh.f32 %v923_v56 }
 0x17d   : > { %v639_v60 = vpop.f32.mrf.mxu0 }
 0x17e   : > { %v3179_v62 = vpop.eup %3178  ;;  %v925_v63 = vpop.f32.mrf.mxu1  ;;  %v640_v5 = vadd.f32 %v3972_v20, %v639_v60 }
 0x17f   : > { %v4088_v1 = vpop.eup %3180  ;;  %v802_v2 = vpack.c.bf16 %v3179_v62, %v3175_v58  ;;  %v926_v6 = vadd.f32 %v4013_v30, %v925_v63  ;;  %v671_v58 = vpop.f32.mrf.mxu3  ;;  %v3031_v63 = vld [vmem:[%s3926_s26 + $0xf0] sm:$0xff] }
 0x180   : > { %v1124_v4 = vpack.c.bf16 %v4088_v1, %v4086_v59  ;;  %3182 = vtanh.f32 %v640_v5  ;;  %v3055_v59 = vld [vmem:[%s4918_s2 + $0xb0] sm:$0xff] }
 0x181   : > { %964 = vmatmul.bf16.gmra.mxu1 %v802_v2  ;;  %3184 = vtanh.f32 %v926_v6 }
 0x185   : > { %v641_v7 = vpop.f32.mrf.mxu0 }
 0x186   : > { %v642_v9 = vadd.f32 %v3972_v20, %v641_v7  ;;  %v927_v10 = vpop.f32.mrf.mxu1  ;;  %v3183_v13 = vpop.eup %3182 }
 0x187   : > { %v928_v11 = vadd.f32 %v4013_v30, %v927_v10  ;;  %v4098_v14 = vpop.eup %3184  ;;  %v674_v5 = vpop.f32.mrf.mxu3 }
 0x188   : > { %3186 = vtanh.f32 %v642_v9  ;;  %2773 = vmatmul.msk.bf16.gmra.mxu3 %vm454_vm1, %v3031_v63 }
 0x189   : > { %3188 = vtanh.f32 %v928_v11 }
 0x18d   : > { %v644_v16 = vpop.f32.mrf.mxu0 }
 0x18e   : > { %v3187_v17 = vpop.eup %3186  ;;  %v645_v23 = vadd.f32 %v3972_v20, %v644_v16  ;;  %v665_v16 = vadd.f32 %v3972_v20, %v664_v37 }
 0x18f   : > { %v4100_v18 = vpop.eup %3188  ;;  %v803_v19 = vpack.c.bf16 %v3187_v17, %v3183_v13  ;;  %v676_v9 = vpop.f32.mrf.mxu3  ;;  %v3032_v13 = vld [vmem:[%s3926_s26 + $0xf8] sm:$0xff]  ;;  %v667_v17 = vadd.f32 %v3972_v20, %v666_v43 }
 0x190   : > { %v1125_v22 = vpack.c.bf16 %v4100_v18, %v4098_v14  ;;  %3190 = vtanh.f32 %v645_v23  ;;  %v677_v37 = vadd.f32 %v3972_v20, %v676_v9  ;;  %v3052_v18 = vld [vmem:[%s4918_s2 + $0x98] sm:$0xff] }
 0x191   : > { %969 = vmatmul.bf16.gmra.mxu1 %v803_v19 }
 0x195   : > { %v646_v25 = vpop.f32.mrf.mxu0 }
 0x196   : > { %v647_v26 = vadd.f32 %v3972_v20, %v646_v25  ;;  %v3191_v27 = vpop.eup %3190 }
 0x197   : > { %v679_v19 = vpop.f32.mrf.mxu3 }
 0x198   : > { %3192 = vtanh.f32 %v647_v26  ;;  %2774 = vmatmul.msk.bf16.gmra.mxu3 %vm454_vm1, %v3032_v13 }
 0x19d   : > { %v649_v29 = vpop.f32.mrf.mxu0 }
 0x19e   : > { %v3193_v31 = vpop.eup %3192  ;;  %v650_v35 = vadd.f32 %v3972_v20, %v649_v29  ;;  %v672_v29 = vadd.f32 %v3972_v20, %v671_v58 }
 0x19f   : > { %v804_v33 = vpack.c.bf16 %v3193_v31, %v3191_v27  ;;  %v681_v26 = vpop.f32.mrf.mxu3  ;;  %v670_v27 = vadd.f32 %v3972_v20, %v669_v53 }
 0x1a0   : > { %3194 = vtanh.f32 %v650_v35  ;;  %v682_v49 = vadd.f32 %v3972_v20, %v681_v26 }
 0x1a1   : > { %974 = vmatmul.bf16.gmra.mxu1 %v804_v33 }
 0x1a5   : > { %v651_v36 = vpop.f32.mrf.mxu0 }
 0x1a6   : > { %v652_v38 = vadd.f32 %v3972_v20, %v651_v36  ;;  %v3195_v39 = vpop.eup %3194  ;;  %v675_v36 = vadd.f32 %v3972_v20, %v674_v5 }
 0x1a7   : > { %v684_v31 = vpop.f32.mrf.mxu3 }
 0x1a8   : > { %3196 = vtanh.f32 %v652_v38 }
 0x1ad   : > { %v654_v42 = vpop.f32.mrf.mxu0 }
 0x1ae   : > { %v3197_v44 = vpop.eup %3196  ;;  %v655_v51 = vadd.f32 %v3972_v20, %v654_v42 }
 0x1af   : > { %v805_v47 = vpack.c.bf16 %v3197_v44, %v3195_v39  ;;  %v686_v38 = vpop.f32.mrf.mxu3 }
 0x1b0   : > { %3198 = vtanh.f32 %v655_v51  ;;  %v687_v58 = vadd.f32 %v3972_v20, %v686_v38 }
 0x1b1   : > { %979 = vmatmul.bf16.gmra.mxu1 %v805_v47  ;;  %v680_v47 = vadd.f32 %v3972_v20, %v679_v19 }
 0x1b5   : > { %v656_v52 = vpop.f32.mrf.mxu0 }
 0x1b6   : > { %v657_v54 = vadd.f32 %v3972_v20, %v656_v52  ;;  %v3199_v55 = vpop.eup %3198 }
 0x1b7   : > { %v689_v43 = vpop.f32.mrf.mxu3 }
 0x1b8   : > { %3200 = vtanh.f32 %v657_v54 }
 0x1bd   : > { %v659_v56 = vpop.f32.mrf.mxu0 }
 0x1be   : > { %v3201_v60 = vpop.eup %3200  ;;  %v660_v2 = vadd.f32 %v3972_v20, %v659_v56 }
 0x1bf   : > { %v806_v62 = vpack.c.bf16 %v3201_v60, %v3199_v55  ;;  %v691_v51 = vpop.f32.mrf.mxu3  ;;  %v685_v55 = vadd.f32 %v3972_v20, %v684_v31 }
 0x1c0   : > { %3202 = vtanh.f32 %v660_v2  ;;  %v692_v5 = vadd.f32 %v3972_v20, %v691_v51  ;;  %v3048_v51 = vld [vmem:[%s4918_s2 + $0x78] sm:$0xff] }
 0x1c1   : > { %984 = vmatmul.bf16.gmra.mxu1 %v806_v62  ;;  %1218 = vmatpush.bf16.msrb.mxu2 %v3048_v51 }
 0x1c5   : > { %v661_v3 = vpop.f32.mrf.mxu0 }
 0x1c6   : > { %v662_v6 = vadd.f32 %v3972_v20, %v661_v3  ;;  %v3203_v7 = vpop.eup %3202  ;;  %v690_v3 = vadd.f32 %v3972_v20, %v689_v43 }
 0x1c8   : > { %3204 = vtanh.f32 %v662_v6 }
 0x1c9   : > { %3206 = vtanh.f32 %v665_v16 }
 0x1ca   : > { %3208 = vtanh.f32 %v667_v17  ;;  %v694_v56 = vpop.f32.mrf.mxu3 }
 0x1cb   : > { %3210 = vtanh.f32 %v670_v27  ;;  %v695_v13 = vadd.f32 %v3972_v20, %v694_v56 }
 0x1cc   : > { %3212 = vtanh.f32 %v672_v29 }
 0x1cd   : > { %3214 = vtanh.f32 %v675_v36 }
 0x1ce   : > { %v3205_v10 = vpop.eup %3204  ;;  %3216 = vtanh.f32 %v677_v37 }
 0x1cf   : > { %v807_v11 = vpack.c.bf16 %v3205_v10, %v3203_v7  ;;  %v3207_v21 = vpop.eup %3206  ;;  %3218 = vtanh.f32 %v680_v47 }
 0x1d0   : > { %v3209_v23 = vpop.eup %3208  ;;  %3220 = vtanh.f32 %v682_v49 }
 0x1d1   : > { %989 = vmatmul.bf16.vlgmr.msra.gmra.mxu2 %v807_v11  ;;  %v808_v25 = vpack.c.bf16 %v3209_v23, %v3207_v21  ;;  %v3211_v33 = vpop.eup %3210  ;;  %3222 = vtanh.f32 %v685_v55 }
 0x1d2   : > { %v3213_v34 = vpop.eup %3212  ;;  %3224 = vtanh.f32 %v687_v58  ;;  %v696_v62 = vpop.f32.mrf.mxu3  ;;  %v3047_v58 = vld [vmem:[%s4918_s2 + $0x70] sm:$0xff] }
 0x1d3   : > { %v809_v35 = vpack.c.bf16 %v3213_v34, %v3211_v33  ;;  %v3215_v39 = vpop.eup %3214  ;;  %3226 = vtanh.f32 %v690_v3  ;;  %v697_v16 = vadd.f32 %v3972_v20, %v696_v62  ;;  %1219 = vmatpush.bf16.msrb.mxu2 %v3047_v58 }
 0x1d4   : > { %v3217_v42 = vpop.eup %3216  ;;  %3228 = vtanh.f32 %v692_v5 }
 0x1d5   : > { %v810_v44 = vpack.c.bf16 %v3217_v42, %v3215_v39  ;;  %v3219_v52 = vpop.eup %3218  ;;  %3230 = vtanh.f32 %v695_v13  ;;  %v3044_v13 = vld [vmem:[%s4918_s2 + $0x58] sm:$0xff] }
 0x1d6   : > { %v3221_v53 = vpop.eup %3220  ;;  %3232 = vtanh.f32 %v697_v16 }
 0x1d7   : > { %v811_v54 = vpack.c.bf16 %v3221_v53, %v3219_v52  ;;  %v3223_v60 = vpop.eup %3222 }
 0x1d8   : > { %v3225_v63 = vpop.eup %3224 }
 0x1d9   : > { %v812_v2 = vpack.c.bf16 %v3225_v63, %v3223_v60  ;;  %v3227_v7 = vpop.eup %3226  ;;  %v3046_v63 = vld [vmem:[%s4918_s2 + $0x68] sm:$0xff] }
 0x1da   : > { %v3229_v9 = vpop.eup %3228  ;;  %1220 = vmatpush.bf16.msrb.mxu2 %v3046_v63 }
 0x1db   : > { %v699_v6 = vpop.f32.mrf.mxu3  ;;  %v813_v10 = vpack.c.bf16 %v3229_v9, %v3227_v7  ;;  %v3231_v19 = vpop.eup %3230  ;;  %v3045_v9 = vld [vmem:[%s4918_s2 + $0x60] sm:$0xff] }
 0x1dc   : > { %v3233_v21 = vpop.eup %3232 }
 0x1dd   : > { %v814_v23 = vpack.c.bf16 %v3233_v21, %v3231_v19 }
 0x1de   : > { %1221 = vmatpush.bf16.msrb.mxu2 %v3045_v9 }
 0x1e1   : > { %994 = vmatmul.bf16.gmra.mxu2 %v808_v25  ;;  %v700_v25 = vadd.f32 %v3972_v20, %v699_v6 }
 0x1e2   : > { %1222 = vmatpush.bf16.msrb.mxu2 %v3044_v13 }
 0x1e3   : > { %v701_v11 = vpop.f32.mrf.mxu3  ;;  %3234 = vtanh.f32 %v700_v25 }
 0x1e4   : > { %v702_v26 = vadd.f32 %v3972_v20, %v701_v11 }
 0x1e6   : > { %3236 = vtanh.f32 %v702_v26 }
 0x1e9   : > { %v3235_v29 = vpop.eup %3234 }
 0x1eb   : > { %v704_v17 = vpop.f32.mrf.mxu3 }
 0x1ec   : > { %v3237_v31 = vpop.eup %3236 }
 0x1ed   : > { %v815_v34 = vpack.c.bf16 %v3237_v31, %v3235_v29  ;;  %v3042_v29 = vld [vmem:[%s4918_s2 + $0x48] sm:$0xff] }
 0x1f1   : > { %999 = vmatmul.bf16.gmra.mxu2 %v809_v35  ;;  %v705_v35 = vadd.f32 %v3972_v20, %v704_v17 }
 0x1f3   : > { %v706_v27 = vpop.f32.mrf.mxu3  ;;  %3238 = vtanh.f32 %v705_v35 }
 0x1f4   : > { %v707_v36 = vadd.f32 %v3972_v20, %v706_v27 }
 0x1f6   : > { %3240 = vtanh.f32 %v707_v36  ;;  %v3041_v36 = vld [vmem:[%s4918_s2 + $0x40] sm:$0xff] }
 0x1f9   : > { %v3239_v42 = vpop.eup %3238 }
 0x1fb   : > { %v709_v33 = vpop.f32.mrf.mxu3 }
 0x1fc   : > { %v3241_v43 = vpop.eup %3240  ;;  %v710_v52 = vadd.f32 %v3972_v20, %v709_v33 }
 0x1fd   : > { %v816_v49 = vpack.c.bf16 %v3241_v43, %v3239_v42 }
 0x201   : > { %1004 = vmatmul.bf16.gmra.mxu2 %v810_v44 }
 0x203   : > { %v711_v38 = vpop.f32.mrf.mxu3 }
 0x20b   : > { %v714_v53 = vpop.f32.mrf.mxu3 }
 0x20c   : > { %v715_v16 = vadd.f32 %v3972_v20, %v714_v53 }
 0x211   : > { %1009 = vmatmul.bf16.gmra.mxu2 %v811_v54  ;;  %v712_v54 = vadd.f32 %v3972_v20, %v711_v38 }
 0x213   : > { %v716_v5 = vpop.f32.mrf.mxu3 }
 0x214   : > { %v717_v17 = vadd.f32 %v3972_v20, %v716_v5 }
 0x21b   : > { %v719_v26 = vpop.f32.mrf.mxu3 }
 0x21c   : > { %v720_v42 = vadd.f32 %v3972_v20, %v719_v26 }
 0x221   : > { %1014 = vmatmul.bf16.gmra.mxu2 %v812_v2 }
 0x223   : > { %v721_v38 = vpop.f32.mrf.mxu3 }
 0x224   : > { %v722_v43 = vadd.f32 %v3972_v20, %v721_v38 }
 0x231   : > { %1019 = vmatmul.bf16.gmra.mxu2 %v813_v10 }
 0x241   : > { %1024 = vmatmul.bf16.gmra.mxu2 %v814_v23  ;;  %v3043_v23 = vld [vmem:[%s4918_s2 + $0x50] sm:$0xff] }
 0x242   : > { %1223 = vmatpush.bf16.msrb.mxu2 %v3043_v23 }
 0x246   : > { %1224 = vmatpush.bf16.msrb.mxu2 %v3042_v29 }
 0x24a   : > { %1225 = vmatpush.bf16.msrb.mxu2 %v3041_v36 }
 0x251   : > { %1029 = vmatmul.bf16.gmra.mxu2 %v815_v34 }
 0x254   : > { %v990_v37 = vpop.f32.mrf.mxu2 }
 0x255   : > { %v991_v39 = vadd.f32 %v4013_v30, %v990_v37 }
 0x257   : > { %3242 = vtanh.f32 %v991_v39 }
 0x25c   : > { %v992_v44 = vpop.f32.mrf.mxu2 }
 0x25d   : > { %v993_v47 = vadd.f32 %v4013_v30, %v992_v44  ;;  %v4147_v55 = vpop.eup %3242 }
 0x25f   : > { %3244 = vtanh.f32 %v993_v47 }
 0x260   : > { %3246 = vtanh.f32 %v710_v52 }
 0x261   : > { %1034 = vmatmul.bf16.gmra.mxu2 %v816_v49  ;;  %3248 = vtanh.f32 %v712_v54 }
 0x264   : > { %v995_v56 = vpop.f32.mrf.mxu2 }
 0x265   : > { %v4152_v60 = vpop.eup %3244  ;;  %v996_v2 = vadd.f32 %v4013_v30, %v995_v56 }
 0x266   : > { %v1138_v62 = vpack.c.bf16 %v4152_v60, %v4147_v55  ;;  %v3247_v3 = vpop.eup %3246 }
 0x267   : > { %v3249_v6 = vpop.eup %3248  ;;  %3250 = vtanh.f32 %v996_v2 }
 0x268   : > { %v817_v11 = vpack.c.bf16 %v3249_v6, %v3247_v3 }
 0x26c   : > { %v997_v7 = vpop.f32.mrf.mxu2 }
 0x26d   : > { %v998_v10 = vadd.f32 %v4013_v30, %v997_v7  ;;  %v4169_v19 = vpop.eup %3250 }
 0x26f   : > { %3252 = vtanh.f32 %v998_v10 }
 0x270   : > { %3254 = vtanh.f32 %v715_v16 }
 0x271   : > { %1039 = vmatmul.bf16.gmra.mxu2 %v817_v11  ;;  %3256 = vtanh.f32 %v717_v17 }
 0x274   : > { %v1000_v21 = vpop.f32.mrf.mxu2 }
 0x275   : > { %v4174_v25 = vpop.eup %3252  ;;  %v1001_v31 = vadd.f32 %v4013_v30, %v1000_v21 }
 0x276   : > { %v1139_v27 = vpack.c.bf16 %v4174_v25, %v4169_v19  ;;  %v3255_v33 = vpop.eup %3254 }
 0x277   : > { %v3257_v34 = vpop.eup %3256  ;;  %3258 = vtanh.f32 %v1001_v31 }
 0x278   : > { %v818_v39 = vpack.c.bf16 %v3257_v34, %v3255_v33 }
 0x27c   : > { %v1002_v35 = vpop.f32.mrf.mxu2 }
 0x27d   : > { %v1003_v37 = vadd.f32 %v4013_v30, %v1002_v35  ;;  %v4188_v44 = vpop.eup %3258  ;;  %v930_v35 = vpop.f32.mrf.mxu1 }
 0x27f   : > { %3260 = vtanh.f32 %v1003_v37 }
 0x280   : > { %3262 = vtanh.f32 %v720_v42 }
 0x281   : > { %1044 = vmatmul.bf16.gmra.mxu2 %v818_v39  ;;  %3264 = vtanh.f32 %v722_v43 }
 0x284   : > { %v1005_v47 = vpop.f32.mrf.mxu2 }
 0x285   : > { %v4190_v49 = vpop.eup %3260  ;;  %v1006_v52 = vadd.f32 %v4013_v30, %v1005_v47  ;;  %v932_v8 = vpop.f32.mrf.mxu1 }
 0x286   : > { %v1140_v51 = vpack.c.bf16 %v4190_v49, %v4188_v44  ;;  %v3263_v53 = vpop.eup %3262 }
 0x287   : > { %v3265_v54 = vpop.eup %3264  ;;  %3266 = vtanh.f32 %v1006_v52 }
 0x288   : > { %v819_v20 = vpack.c.bf16 %v3265_v54, %v3263_v53 }
 0x28c   : > { %v1007_v56 = vpop.f32.mrf.mxu2 }
 0x28d   : > { %v1008_v58 = vadd.f32 %v4013_v30, %v1007_v56  ;;  %v4196_v63 = vpop.eup %3266  ;;  %v4247_v52 = vpop.f32.mrf.mxu1 }
 0x28f   : > { %3268 = vtanh.f32 %v1008_v58 }
 0x291   : > { %1049 = vmatmul.bf16.gmra.mxu2 %v819_v20 }
 0x294   : > { %v1010_v2 = vpop.f32.mrf.mxu2 }
 0x295   : > { %v4198_v3 = vpop.eup %3268  ;;  %v1011_v6 = vadd.f32 %v4013_v30, %v1010_v2  ;;  %v937_v56 = vpop.f32.mrf.mxu1 }
 0x296   : > { %v1141_v5 = vpack.c.bf16 %v4198_v3, %v4196_v63 }
 0x297   : > { %3270 = vtanh.f32 %v1011_v6 }
 0x29c   : > { %v1012_v7 = vpop.f32.mrf.mxu2 }
 0x29d   : > { %v1013_v9 = vadd.f32 %v4013_v30, %v1012_v7  ;;  %v4207_v10 = vpop.eup %3270  ;;  %v4261_v6 = vpop.f32.mrf.mxu1 }
 0x29f   : > { %3272 = vtanh.f32 %v1013_v9  ;;  %v3056_v9 = vld [vmem:[%s4918_s2 + $0xb8] sm:$0xff] }
 0x2a0   : > { %1550 = vmatpush.bf16.msrb.mxu3 %v3056_v9 }
 0x2a1   : > { %1226 = vmatmul.bf16.vlgmr.msrb.gmra.mxu2 %v1119_v48 }
 0x2a4   : > { %v1015_v11 = vpop.f32.mrf.mxu2  ;;  %1551 = vmatpush.bf16.msrb.mxu3 %v3055_v59 }
 0x2a5   : > { %v4209_v13 = vpop.eup %3272  ;;  %v1016_v17 = vadd.f32 %v4013_v30, %v1015_v11 }
 0x2a6   : > { %v1142_v16 = vpack.c.bf16 %v4209_v13, %v4207_v10 }
 0x2a7   : > { %3274 = vtanh.f32 %v1016_v17  ;;  %v942_v17 = vpop.f32.mrf.mxu1 }
 0x2ac   : > { %v1017_v21 = vpop.f32.mrf.mxu2 }
 0x2ad   : > { %v1018_v23 = vadd.f32 %v4013_v30, %v1017_v21  ;;  %v4218_v41 = vpop.eup %3274  ;;  %v3054_v21 = vld [vmem:[%s4918_s2 + $0xa8] sm:$0xff] }
 0x2ae   : > { %1552 = vmatpush.bf16.msrb.mxu3 %v3054_v21 }
 0x2af   : > { %3276 = vtanh.f32 %v1018_v23  ;;  %v933_v23 = vadd.f32 %v4013_v30, %v932_v8 }
 0x2b1   : > { %1231 = vmatmul.bf16.gmra.mxu2 %v1120_v0 }
 0x2b4   : > { %v1020_v45 = vpop.f32.mrf.mxu2 }
 0x2b5   : > { %v4220_v48 = vpop.eup %3276  ;;  %v1021_v29 = vadd.f32 %v4013_v30, %v1020_v45  ;;  %v3053_v45 = vld [vmem:[%s4918_s2 + $0xa0] sm:$0xff] }
 0x2b6   : > { %v1143_v26 = vpack.c.bf16 %v4220_v48, %v4218_v41  ;;  %1553 = vmatpush.bf16.msrb.mxu3 %v3053_v45  ;;  %v943_v45 = vadd.f32 %v4013_v30, %v942_v17 }
 0x2b7   : > { %3278 = vtanh.f32 %v1021_v29 }
 0x2ba   : > { %1554 = vmatpush.bf16.msrb.mxu3 %v3052_v18  ;;  %v941_v18 = vadd.f32 %v4013_v30, %v4261_v6 }
 0x2bc   : > { %v1022_v31 = vpop.f32.mrf.mxu2 }
 0x2bd   : > { %v1023_v33 = vadd.f32 %v4013_v30, %v1022_v31  ;;  %v4229_v57 = vpop.eup %3278  ;;  %v931_v31 = vadd.f32 %v4013_v30, %v930_v35  ;;  %v3051_v35 = vld [vmem:[%s4918_s2 + $0x90] sm:$0xff] }
 0x2be   : > { %1555 = vmatpush.bf16.msrb.mxu3 %v3051_v35 }
 0x2bf   : > { %3280 = vtanh.f32 %v1023_v33 }
 0x2c1   : > { %1236 = vmatmul.bf16.gmra.mxu2 %v1121_v15 }
 0x2c4   : > { %v1025_v61 = vpop.f32.mrf.mxu2 }
 0x2c5   : > { %v4231_v0 = vpop.eup %3280  ;;  %v1026_v36 = vadd.f32 %v4013_v30, %v1025_v61 }
 0x2c6   : > { %v1144_v34 = vpack.c.bf16 %v4231_v0, %v4229_v57  ;;  %v3066_v57 = vld [vmem:[%s4918_s2 + $0x108] sm:$0xff] }
 0x2c7   : > { %3282 = vtanh.f32 %v1026_v36  ;;  %v4295_v36 = vpop.f32.mrf.mxu1 }
 0x2cc   : > { %v1027_v37 = vpop.f32.mrf.mxu2 }
 0x2cd   : > { %v1028_v38 = vadd.f32 %v4013_v30, %v1027_v37  ;;  %v4240_v12 = vpop.eup %3282 }
 0x2cf   : > { %3284 = vtanh.f32 %v1028_v38 }
 0x2d1   : > { %1241 = vmatmul.bf16.gmra.mxu2 %v1122_v32 }
 0x2d4   : > { %v1030_v15 = vpop.f32.mrf.mxu2 }
 0x2d5   : > { %v4242_v39 = vpop.eup %3284  ;;  %v1031_v43 = vadd.f32 %v4013_v30, %v1030_v15 }
 0x2d6   : > { %v1145_v42 = vpack.c.bf16 %v4242_v39, %v4240_v12 }
 0x2d7   : > { %3286 = vtanh.f32 %v1031_v43  ;;  %v947_v43 = vpop.f32.mrf.mxu1 }
 0x2dc   : > { %v1032_v47 = vpop.f32.mrf.mxu2 }
 0x2dd   : > { %v1033_v53 = vadd.f32 %v4013_v30, %v1032_v47  ;;  %v4253_v24 = vpop.eup %3286 }
 0x2df   : > { %3288 = vtanh.f32 %v1033_v53  ;;  %v3050_v53 = vld [vmem:[%s4918_s2 + $0x88] sm:$0xff]  ;;  %v950_v59 = vpop.f32.mrf.mxu1 }
 0x2e0   : > { %1556 = vmatpush.bf16.msrb.mxu3 %v3050_v53 }
 0x2e1   : > { %1246 = vmatmul.bf16.gmra.mxu2 %v1123_v50 }
 0x2e4   : > { %v1035_v28 = vpop.f32.mrf.mxu2 }
 0x2e5   : > { %v4255_v32 = vpop.eup %3288  ;;  %v1036_v58 = vadd.f32 %v4013_v30, %v1035_v28  ;;  %v938_v28 = vadd.f32 %v4013_v30, %v937_v56 }
 0x2e6   : > { %v1146_v54 = vpack.c.bf16 %v4255_v32, %v4253_v24 }
 0x2e7   : > { %3290 = vtanh.f32 %v1036_v58  ;;  %v3049_v58 = vld [vmem:[%s4918_s2 + $0x80] sm:$0xff] }
 0x2e8   : > { %1557 = vmatpush.bf16.msrb.mxu3 %v3049_v58 }
 0x2ec   : > { %v1037_v20 = vpop.f32.mrf.mxu2 }
 0x2ed   : > { %v1038_v2 = vadd.f32 %v4013_v30, %v1037_v20  ;;  %v4266_v40 = vpop.eup %3290 }
 0x2ef   : > { %3292 = vtanh.f32 %v1038_v2  ;;  %v936_v2 = vadd.f32 %v4013_v30, %v4247_v52 }
 0x2f1   : > { %1251 = vmatmul.bf16.gmra.mxu2 %v1124_v4 }
 0x2f4   : > { %v1040_v46 = vpop.f32.mrf.mxu2 }
 0x2f5   : > { %v4268_v50 = vpop.eup %3292  ;;  %v1041_v11 = vadd.f32 %v4013_v30, %v1040_v46 }
 0x2f6   : > { %v1147_v7 = vpack.c.bf16 %v4268_v50, %v4266_v40 }
 0x2f7   : > { %3294 = vtanh.f32 %v1041_v11 }
 0x2fc   : > { %v1042_v1 = vpop.f32.mrf.mxu2 }
 0x2fd   : > { %v1043_v4 = vadd.f32 %v4013_v30, %v1042_v1  ;;  %v4290_v29 = vpop.eup %3294 }
 0x2ff   : > { %3296 = vtanh.f32 %v1043_v4 }
 0x300   : > { %3298 = vtanh.f32 %v933_v23 }
 0x301   : > { %1256 = vmatmul.bf16.gmra.mxu2 %v1125_v22  ;;  %3300 = vtanh.f32 %v931_v31  ;;  %v952_v31 = vpop.f32.mrf.mxu1 }
 0x304   : > { %v1045_v33 = vpop.f32.mrf.mxu2 }
 0x305   : > { %v4293_v61 = vpop.eup %3296  ;;  %v1046_v22 = vadd.f32 %v4013_v30, %v1045_v33 }
 0x306   : > { %v1148_v14 = vpack.c.bf16 %v4293_v61, %v4290_v29  ;;  %v3299_v37 = vpop.eup %3298 }
 0x307   : > { %v3301_v15 = vpop.eup %3300  ;;  %3302 = vtanh.f32 %v1046_v22 }
 0x308   : > { %v1126_v47 = vpack.c.bf16 %v3299_v37, %v3301_v15  ;;  %v4334_v37 = vld [vmem:[%s4920_s4 + $0x2] ss:$0 sm:$0xff] }
 0x30c   : > { %v1047_v38 = vpop.f32.mrf.mxu2 }
 0x30d   : > { %v1048_v8 = vadd.f32 %v4013_v30, %v1047_v38  ;;  %v4314_v20 = vpop.eup %3302 }
 0x30f   : > { %3304 = vtanh.f32 %v1048_v8 }
 0x310   : > { %3306 = vtanh.f32 %v938_v28  ;;  %v4343_v28 = vld [vmem:[%s4920_s4 + $0x1] ss:$0 sm:$0xff] }
 0x311   : > { %1261 = vmatmul.bf16.gmra.mxu2 %v1126_v47  ;;  %3308 = vtanh.f32 %v936_v2  ;;  %v955_v47 = vpop.f32.mrf.mxu1  ;;  %v948_v58 = vadd.f32 %v4343_v28, %v947_v43 }
 0x314   : > { %v1050_v46 = vpop.f32.mrf.mxu2 }
 0x315   : > { %v4318_v9 = vpop.eup %3304  ;;  %v1051_v56 = vadd.f32 %v4013_v30, %v1050_v46  ;;  %v946_v46 = vadd.f32 %v4343_v28, %v4295_v36  ;;  %v3064_v36 = vld [vmem:[%s4918_s2 + $0xf8] sm:$0xff] }
 0x316   : > { %v1149_v11 = vpack.c.bf16 %v4318_v9, %v4314_v20  ;;  %v3307_v1 = vpop.eup %3306  ;;  %1882 = vmatpush.bf16.msrb.mxu0 %v3064_v36  ;;  %v4537_v20 = vld [vmem:[%s4920_s4 + $0x2] ss:$0 sm:$0xff] }
 0x317   : > { %v3309_v23 = vpop.eup %3308  ;;  %3310 = vtanh.f32 %v1051_v56 }
 0x318   : > { %v1127_v52 = vpack.c.bf16 %v3307_v1, %v3309_v23 }
 0x31c   : > { %v1052_v4 = vpop.f32.mrf.mxu2 }
 0x31d   : > { %v1053_v21 = vadd.f32 %v4013_v30, %v1052_v4  ;;  %v4325_v33 = vpop.eup %3310 }
 0x31f   : > { %3312 = vtanh.f32 %v1053_v21  ;;  %v957_v21 = vpop.f32.mrf.mxu1 }
 0x320   : > { %3314 = vtanh.f32 %v943_v45 }
 0x321   : > { %1266 = vmatmul.bf16.gmra.mxu2 %v1127_v52  ;;  %3316 = vtanh.f32 %v941_v18 }
 0x324   : > { %v1227_v22 = vpop.f32.mrf.mxu2 }
 0x325   : > { %v4329_v35 = vpop.eup %3312  ;;  %v1228_v17 = vadd.f32 %v4334_v37, %v1227_v22 }
 0x326   : > { %v1150_v38 = vpack.c.bf16 %v4329_v35, %v4325_v33  ;;  %v3315_v8 = vpop.eup %3314 }
 0x327   : > { %v3317_v6 = vpop.eup %3316  ;;  %3318 = vtanh.f32 %v1228_v17  ;;  %v960_v17 = vpop.f32.mrf.mxu1 }
 0x328   : > { %v1128_v53 = vpack.c.bf16 %v3315_v8, %v3317_v6  ;;  %v953_v8 = vadd.f32 %v4343_v28, %v952_v31 }
 0x32c   : > { %v1229_v15 = vpop.f32.mrf.mxu2 }
 0x32d   : > { %v1230_v30 = vadd.f32 %v4334_v37, %v1229_v15  ;;  %v3319_v2 = vpop.eup %3318 }
 0x32f   : > { %3320 = vtanh.f32 %v1230_v30  ;;  %v951_v30 = vadd.f32 %v4343_v28, %v950_v59  ;;  %v958_v59 = vadd.f32 %v4343_v28, %v957_v21 }
 0x330   : > { %3322 = vtanh.f32 %v948_v58 }
 0x331   : > { %1271 = vmatmul.bf16.gmra.mxu2 %v1128_v53  ;;  %3324 = vtanh.f32 %v946_v46  ;;  %v962_v46 = vpop.f32.mrf.mxu1 }
 0x334   : > { %v1232_v56 = vpop.f32.mrf.mxu2 }
 0x335   : > { %v3321_v1 = vpop.eup %3320  ;;  %v1233_v23 = vadd.f32 %v4334_v37, %v1232_v56 }
 0x336   : > { %v1451_v4 = vpack.c.bf16 %v3321_v1, %v3319_v2  ;;  %v3323_v52 = vpop.eup %3322 }
 0x337   : > { %v3325_v22 = vpop.eup %3324  ;;  %3326 = vtanh.f32 %v1233_v23 }
 0x338   : > { %1558 = vmatmul.bf16.vlgmr.msrb.gmra.mxu3 %v1451_v4  ;;  %v1129_v43 = vpack.c.bf16 %v3323_v52, %v3325_v22 }
 0x33c   : > { %v1234_v45 = vpop.f32.mrf.mxu2 }
 0x33d   : > { %v1235_v18 = vadd.f32 %v4334_v37, %v1234_v45  ;;  %v3327_v15 = vpop.eup %3326  ;;  %v956_v45 = vadd.f32 %v4343_v28, %v955_v47  ;;  %v963_v47 = vadd.f32 %v4343_v28, %v962_v46 }
 0x33f   : > { %3328 = vtanh.f32 %v1235_v18 }
 0x340   : > { %3330 = vtanh.f32 %v953_v8 }
 0x341   : > { %1276 = vmatmul.bf16.gmra.mxu2 %v1129_v43  ;;  %3332 = vtanh.f32 %v951_v30  ;;  %v965_v43 = vpop.f32.mrf.mxu1 }
 0x344   : > { %v1237_v6 = vpop.f32.mrf.mxu2 }
 0x345   : > { %v3329_v53 = vpop.eup %3328  ;;  %v1238_v2 = vadd.f32 %v4334_v37, %v1237_v6 }
 0x346   : > { %v1452_v58 = vpack.c.bf16 %v3329_v53, %v3327_v15  ;;  %v3331_v56 = vpop.eup %3330 }
 0x347   : > { %v3333_v23 = vpop.eup %3332  ;;  %3334 = vtanh.f32 %v1238_v2 }
 0x348   : > { %1563 = vmatmul.bf16.gmra.mxu3 %v1452_v58  ;;  %v1130_v31 = vpack.c.bf16 %v3331_v56, %v3333_v23  ;;  %v961_v56 = vadd.f32 %v4343_v28, %v960_v17 }
 0x349   : > { %v967_v58 = vpop.f32.mrf.mxu1 }
 0x34c   : > { %v1239_v1 = vpop.f32.mrf.mxu2 }
 0x34d   : > { %v1240_v4 = vadd.f32 %v4334_v37, %v1239_v1  ;;  %v3335_v52 = vpop.eup %3334 }
 0x34f   : > { %3336 = vtanh.f32 %v1240_v4 }
 0x350   : > { %3338 = vtanh.f32 %v958_v59 }
 0x351   : > { %1281 = vmatmul.bf16.gmra.mxu2 %v1130_v31  ;;  %3340 = vtanh.f32 %v956_v45  ;;  %v3063_v31 = vld [vmem:[%s4918_s2 + $0xf0] sm:$0xff]  ;;  %v970_v59 = vpop.f32.mrf.mxu1 }
 0x352   : > { %1883 = vmatpush.bf16.msrb.mxu0 %v3063_v31 }
 0x354   : > { %v1242_v18 = vpop.f32.mrf.mxu2 }
 0x355   : > { %v3337_v22 = vpop.eup %3336  ;;  %v1243_v8 = vadd.f32 %v4334_v37, %v1242_v18 }
 0x356   : > { %v1453_v36 = vpack.c.bf16 %v3337_v22, %v3335_v52  ;;  %v3339_v15 = vpop.eup %3338 }
 0x357   : > { %v3341_v53 = vpop.eup %3340  ;;  %3342 = vtanh.f32 %v1243_v8 }
 0x358   : > { %1568 = vmatmul.bf16.gmra.mxu3 %v1453_v36  ;;  %v1131_v21 = vpack.c.bf16 %v3339_v15, %v3341_v53  ;;  %v968_v36 = vadd.f32 %v4343_v28, %v967_v58 }
 0x359   : > { %v972_v8 = vpop.f32.mrf.mxu1 }
 0x35c   : > { %v1244_v30 = vpop.f32.mrf.mxu2 }
 0x35d   : > { %v1245_v6 = vadd.f32 %v4334_v37, %v1244_v30  ;;  %v3343_v2 = vpop.eup %3342  ;;  %v966_v30 = vadd.f32 %v4343_v28, %v965_v43  ;;  %v973_v43 = vadd.f32 %v4343_v28, %v972_v8 }
 0x35f   : > { %3344 = vtanh.f32 %v1245_v6 }
 0x360   : > { %3346 = vtanh.f32 %v963_v47 }
 0x361   : > { %1286 = vmatmul.bf16.gmra.mxu2 %v1131_v21  ;;  %3348 = vtanh.f32 %v961_v56 }
 0x364   : > { %v1247_v1 = vpop.f32.mrf.mxu2 }
 0x365   : > { %v3345_v4 = vpop.eup %3344  ;;  %v1248_v52 = vadd.f32 %v4334_v37, %v1247_v1  ;;  %v975_v1 = vpop.f32.mrf.mxu1 }
 0x366   : > { %v1454_v23 = vpack.c.bf16 %v3345_v4, %v3343_v2  ;;  %v3347_v45 = vpop.eup %3346 }
 0x367   : > { %v3349_v22 = vpop.eup %3348  ;;  %3350 = vtanh.f32 %v1248_v52  ;;  %v971_v52 = vadd.f32 %v4343_v28, %v970_v59  ;;  %v3062_v59 = vld [vmem:[%s4918_s2 + $0xe8] sm:$0xff] }
 0x368   : > { %1573 = vmatmul.bf16.gmra.mxu3 %v1454_v23  ;;  %v1132_v17 = vpack.c.bf16 %v3347_v45, %v3349_v22  ;;  %1884 = vmatpush.bf16.msrb.mxu0 %v3062_v59 }
 0x36c   : > { %v1249_v18 = vpop.f32.mrf.mxu2 }
 0x36d   : > { %v1250_v46 = vadd.f32 %v4334_v37, %v1249_v18  ;;  %v3351_v15 = vpop.eup %3350  ;;  %v977_v22 = vpop.f32.mrf.mxu1 }
 0x36f   : > { %3352 = vtanh.f32 %v1250_v46 }
 0x370   : > { %3354 = vtanh.f32 %v968_v36 }
 0x371   : > { %1291 = vmatmul.bf16.gmra.mxu2 %v1132_v17  ;;  %3356 = vtanh.f32 %v966_v30 }
 0x374   : > { %v1252_v6 = vpop.f32.mrf.mxu2 }
 0x375   : > { %v3353_v53 = vpop.eup %3352  ;;  %v1253_v47 = vadd.f32 %v4334_v37, %v1252_v6 }
 0x376   : > { %v1455_v21 = vpack.c.bf16 %v3353_v53, %v3351_v15  ;;  %v3355_v2 = vpop.eup %3354  ;;  %v980_v53 = vpop.f32.mrf.mxu1 }
 0x377   : > { %v3357_v23 = vpop.eup %3356  ;;  %3358 = vtanh.f32 %v1253_v47 }
 0x378   : > { %1578 = vmatmul.bf16.gmra.mxu3 %v1455_v21  ;;  %v1133_v58 = vpack.c.bf16 %v3355_v2, %v3357_v23  ;;  %v978_v21 = vadd.f32 %v4343_v28, %v977_v22  ;;  %v976_v2 = vadd.f32 %v4343_v28, %v975_v1  ;;  %v3060_v1 = vld [vmem:[%s4918_s2 + $0xd8] sm:$0xff] }
 0x37c   : > { %v1254_v56 = vpop.f32.mrf.mxu2 }
 0x37d   : > { %v1255_v4 = vadd.f32 %v4334_v37, %v1254_v56  ;;  %v3359_v31 = vpop.eup %3358 }
 0x37f   : > { %3360 = vtanh.f32 %v1255_v4 }
 0x380   : > { %3362 = vtanh.f32 %v973_v43  ;;  %v3061_v43 = vld [vmem:[%s4918_s2 + $0xe0] sm:$0xff] }
 0x381   : > { %1296 = vmatmul.bf16.gmra.mxu2 %v1133_v58  ;;  %3364 = vtanh.f32 %v971_v52  ;;  %1885 = vmatpush.bf16.msrb.mxu0 %v3061_v43 }
 0x384   : > { %v1257_v45 = vpop.f32.mrf.mxu2 }
 0x385   : > { %v3361_v18 = vpop.eup %3360  ;;  %v1258_v17 = vadd.f32 %v4334_v37, %v1257_v45  ;;  %1886 = vmatpush.bf16.msrb.mxu0 %v3060_v1 }
 0x386   : > { %v1456_v46 = vpack.c.bf16 %v3361_v18, %v3359_v31  ;;  %v3363_v36 = vpop.eup %3362  ;;  %v982_v31 = vpop.f32.mrf.mxu1 }
 0x387   : > { %v3365_v6 = vpop.eup %3364  ;;  %3366 = vtanh.f32 %v1258_v17  ;;  %v983_v17 = vadd.f32 %v4343_v28, %v982_v31 }
 0x388   : > { %1583 = vmatmul.bf16.gmra.mxu3 %v1456_v46  ;;  %v1134_v8 = vpack.c.bf16 %v3363_v36, %v3365_v6  ;;  %v3059_v36 = vld [vmem:[%s4918_s2 + $0xd0] sm:$0xff] }
 0x389   : > { %1887 = vmatpush.bf16.msrb.mxu0 %v3059_v36 }
 0x38c   : > { %v1259_v15 = vpop.f32.mrf.mxu2 }
 0x38d   : > { %v1260_v30 = vadd.f32 %v4334_v37, %v1259_v15  ;;  %v3367_v47 = vpop.eup %3366 }
 0x38e   : > { %v985_v59 = vpop.f32.mrf.mxu1 }
 0x38f   : > { %3368 = vtanh.f32 %v1260_v30  ;;  %v981_v30 = vadd.f32 %v4343_v28, %v980_v53 }
 0x390   : > { %3370 = vtanh.f32 %v978_v21 }
 0x391   : > { %1301 = vmatmul.bf16.gmra.mxu2 %v1134_v8  ;;  %3372 = vtanh.f32 %v976_v2 }
 0x394   : > { %v1262_v56 = vpop.f32.mrf.mxu2 }
 0x395   : > { %v3369_v4 = vpop.eup %3368  ;;  %v1263_v58 = vadd.f32 %v4334_v37, %v1262_v56  ;;  %v3057_v56 = vld [vmem:[%s4918_s2 + $0xc0] sm:$0xff] }
 0x396   : > { %v1457_v23 = vpack.c.bf16 %v3369_v4, %v3367_v47  ;;  %v3371_v52 = vpop.eup %3370  ;;  %v3058_v47 = vld [vmem:[%s4918_s2 + $0xc8] sm:$0xff]  ;;  %v987_v43 = vpop.f32.mrf.mxu1 }
 0x397   : > { %v3373_v46 = vpop.eup %3372  ;;  %3374 = vtanh.f32 %v1263_v58  ;;  %1888 = vmatpush.bf16.msrb.mxu0 %v3058_v47 }
 0x398   : > { %1588 = vmatmul.bf16.gmra.mxu3 %v1457_v23  ;;  %v1135_v22 = vpack.c.bf16 %v3371_v52, %v3373_v46  ;;  %v988_v52 = vadd.f32 %v4343_v28, %v987_v43 }
 0x39b   : > { %1889 = vmatpush.bf16.msrb.mxu0 %v3057_v56 }
 0x39c   : > { %v1264_v45 = vpop.f32.mrf.mxu2 }
 0x39d   : > { %v1265_v18 = vadd.f32 %v4334_v37, %v1264_v45  ;;  %v3375_v15 = vpop.eup %3374 }
 0x39f   : > { %3376 = vtanh.f32 %v1265_v18  ;;  %v986_v18 = vadd.f32 %v4343_v28, %v985_v59 }
 0x3a0   : > { %3378 = vtanh.f32 %v983_v17 }
 0x3a1   : > { %1306 = vmatmul.bf16.gmra.mxu2 %v1135_v22  ;;  %3380 = vtanh.f32 %v981_v30 }
 0x3a4   : > { %v1267_v6 = vpop.f32.mrf.mxu2 }
 0x3a5   : > { %v3377_v8 = vpop.eup %3376  ;;  %v1268_v2 = vadd.f32 %v4334_v37, %v1267_v6  ;;  %v4408_v6 = vld [vmem:[%s4920_s4 + $0x3] ss:$0 sm:$0xff] }
 0x3a6   : > { %v1458_v21 = vpack.c.bf16 %v3377_v8, %v3375_v15  ;;  %v3379_v53 = vpop.eup %3378 }
 0x3a7   : > { %v3381_v58 = vpop.eup %3380  ;;  %3382 = vtanh.f32 %v1268_v2 }
 0x3a8   : > { %1593 = vmatmul.bf16.gmra.mxu3 %v1458_v21  ;;  %v1136_v31 = vpack.c.bf16 %v3379_v53, %v3381_v58 }
 0x3ac   : > { %v1269_v4 = vpop.f32.mrf.mxu2 }
 0x3ad   : > { %v1270_v23 = vadd.f32 %v4334_v37, %v1269_v4  ;;  %v3383_v45 = vpop.eup %3382 }
 0x3af   : > { %3384 = vtanh.f32 %v1270_v23 }
 0x3b0   : > { %3386 = vtanh.f32 %v988_v52 }
 0x3b1   : > { %1311 = vmatmul.bf16.gmra.mxu2 %v1136_v31  ;;  %3388 = vtanh.f32 %v986_v18 }
 0x3b4   : > { %v1272_v46 = vpop.f32.mrf.mxu2 }
 0x3b5   : > { %v3385_v1 = vpop.eup %3384  ;;  %v1273_v17 = vadd.f32 %v4334_v37, %v1272_v46 }
 0x3b6   : > { %v1459_v22 = vpack.c.bf16 %v3385_v1, %v3383_v45  ;;  %v3387_v15 = vpop.eup %3386 }
 0x3b7   : > { %v3389_v21 = vpop.eup %3388  ;;  %3390 = vtanh.f32 %v1273_v17 }
 0x3b8   : > { %1598 = vmatmul.bf16.gmra.mxu3 %v1459_v22  ;;  %v1137_v28 = vpack.c.bf16 %v3387_v15, %v3389_v21 }
 0x3bb   : > { %v1559_v36 = vpop.f32.mrf.mxu3 }
 0x3bc   : > { %v1274_v30 = vpop.f32.mrf.mxu2  ;;  %v1560_v59 = vadd.f32 %v4408_v6, %v1559_v36 }
 0x3bd   : > { %v1275_v8 = vadd.f32 %v4334_v37, %v1274_v30  ;;  %v3391_v2 = vpop.eup %3390 }
 0x3bf   : > { %3392 = vtanh.f32 %v1275_v8 }
 0x3c0   : > { %3394 = vtanh.f32 %v1560_v59 }
 0x3c1   : > { %1316 = vmatmul.bf16.gmra.mxu2 %v1137_v28 }
 0x3c3   : > { %v1561_v47 = vpop.f32.mrf.mxu3 }
 0x3c4   : > { %v1562_v56 = vadd.f32 %v4408_v6, %v1561_v47  ;;  %v1277_v53 = vpop.f32.mrf.mxu2 }
 0x3c5   : > { %v3393_v4 = vpop.eup %3392  ;;  %v1278_v58 = vadd.f32 %v4334_v37, %v1277_v53 }
 0x3c6   : > { %3396 = vtanh.f32 %v1562_v56  ;;  %v1460_v23 = vpack.c.bf16 %v3393_v4, %v3391_v2  ;;  %v3395_v43 = vpop.eup %3394 }
 0x3c7   : > { %3398 = vtanh.f32 %v1278_v58 }
 0x3c8   : > { %1603 = vmatmul.bf16.gmra.mxu3 %v1460_v23 }
 0x3cb   : > { %v1564_v31 = vpop.f32.mrf.mxu3 }
 0x3cc   : > { %v3397_v52 = vpop.eup %3396  ;;  %v1279_v45 = vpop.f32.mrf.mxu2  ;;  %v1565_v1 = vadd.f32 %v4408_v6, %v1564_v31 }
 0x3cd   : > { %v1280_v18 = vadd.f32 %v4334_v37, %v1279_v45  ;;  %v1783_v46 = vpack.c.bf16 %v3397_v52, %v3395_v43  ;;  %v3399_v17 = vpop.eup %3398 }
 0x3cf   : > { %3400 = vtanh.f32 %v1280_v18  ;;  %1890 = vmatmul.bf16.vlgmr.msrb.gmra.mxu0 %v1783_v46 }
 0x3d0   : > { %3402 = vtanh.f32 %v1565_v1 }
 0x3d1   : > { %1321 = vmatmul.bf16.gmra.mxu2 %v1138_v62  ;;  %v3072_v62 = vld [vmem:[%s4918_s2 + $0x138] sm:$0xff] }
 0x3d2   : > { %2214 = vmatpush.bf16.msrb.mxu1 %v3072_v62 }
 0x3d3   : > { %v1566_v22 = vpop.f32.mrf.mxu3 }
 0x3d4   : > { %v1567_v36 = vadd.f32 %v4408_v6, %v1566_v22  ;;  %v1282_v15 = vpop.f32.mrf.mxu2 }
 0x3d5   : > { %v3401_v30 = vpop.eup %3400  ;;  %v1283_v21 = vadd.f32 %v4334_v37, %v1282_v15 }
 0x3d6   : > { %3404 = vtanh.f32 %v1567_v36  ;;  %v1461_v8 = vpack.c.bf16 %v3401_v30, %v3399_v17  ;;  %v3403_v28 = vpop.eup %3402 }
 0x3d7   : > { %3406 = vtanh.f32 %v1283_v21 }
 0x3d8   : > { %1608 = vmatmul.bf16.gmra.mxu3 %v1461_v8 }
 0x3db   : > { %v1569_v59 = vpop.f32.mrf.mxu3 }
 0x3dc   : > { %v3405_v47 = vpop.eup %3404  ;;  %v1284_v2 = vpop.f32.mrf.mxu2  ;;  %v1570_v60 = vadd.f32 %v4408_v6, %v1569_v59 }
 0x3dd   : > { %v1285_v56 = vadd.f32 %v4334_v37, %v1284_v2  ;;  %v1784_v55 = vpack.c.bf16 %v3405_v47, %v3403_v28  ;;  %v3407_v4 = vpop.eup %3406 }
 0x3df   : > { %3408 = vtanh.f32 %v1285_v56  ;;  %1895 = vmatmul.bf16.gmra.mxu0 %v1784_v55 }
 0x3e0   : > { %3410 = vtanh.f32 %v1570_v60 }
 0x3e1   : > { %1326 = vmatmul.bf16.gmra.mxu2 %v1139_v27 }
 0x3e3   : > { %v1571_v53 = vpop.f32.mrf.mxu3 }
 0x3e4   : > { %v1572_v23 = vadd.f32 %v4408_v6, %v1571_v53  ;;  %v1287_v58 = vpop.f32.mrf.mxu2 }
 0x3e5   : > { %v3409_v43 = vpop.eup %3408  ;;  %v1288_v52 = vadd.f32 %v4334_v37, %v1287_v58 }
 0x3e6   : > { %3412 = vtanh.f32 %v1572_v23  ;;  %v1462_v31 = vpack.c.bf16 %v3409_v43, %v3407_v4  ;;  %v3411_v45 = vpop.eup %3410  ;;  %v3071_v23 = vld [vmem:[%s4918_s2 + $0x130] sm:$0xff] }
 0x3e7   : > { %3414 = vtanh.f32 %v1288_v52  ;;  %2215 = vmatpush.bf16.msrb.mxu1 %v3071_v23 }
 0x3e8   : > { %1613 = vmatmul.bf16.gmra.mxu3 %v1462_v31 }
 0x3eb   : > { %v1574_v19 = vpop.f32.mrf.mxu3 }
 0x3ec   : > { %v3413_v25 = vpop.eup %3412  ;;  %v1289_v27 = vpop.f32.mrf.mxu2  ;;  %v1575_v1 = vadd.f32 %v4408_v6, %v1574_v19 }
 0x3ed   : > { %v1290_v18 = vadd.f32 %v4334_v37, %v1289_v27  ;;  %v1785_v46 = vpack.c.bf16 %v3413_v25, %v3411_v45  ;;  %v3415_v17 = vpop.eup %3414 }
 0x3ef   : > { %3416 = vtanh.f32 %v1290_v18  ;;  %1900 = vmatmul.bf16.gmra.mxu0 %v1785_v46 }
 0x3f0   : > { %3418 = vtanh.f32 %v1575_v1 }
 0x3f1   : > { %1331 = vmatmul.bf16.gmra.mxu2 %v1140_v51 }
 0x3f3   : > { %v1576_v22 = vpop.f32.mrf.mxu3 }
 0x3f4   : > { %v1577_v36 = vadd.f32 %v4408_v6, %v1576_v22  ;;  %v1292_v15 = vpop.f32.mrf.mxu2 }
 0x3f5   : > { %v3417_v30 = vpop.eup %3416  ;;  %v1293_v21 = vadd.f32 %v4334_v37, %v1292_v15 }
 0x3f6   : > { %3420 = vtanh.f32 %v1577_v36  ;;  %v1463_v8 = vpack.c.bf16 %v3417_v30, %v3415_v17  ;;  %v3419_v28 = vpop.eup %3418 }
 0x3f7   : > { %3422 = vtanh.f32 %v1293_v21 }
 0x3f8   : > { %1618 = vmatmul.bf16.gmra.mxu3 %v1463_v8 }
 0x3fb   : > { %v1579_v59 = vpop.f32.mrf.mxu3 }
 0x3fc   : > { %v3421_v47 = vpop.eup %3420  ;;  %v1294_v2 = vpop.f32.mrf.mxu2  ;;  %v1580_v49 = vadd.f32 %v4408_v6, %v1579_v59 }
 0x3fd   : > { %v1295_v56 = vadd.f32 %v4334_v37, %v1294_v2  ;;  %v1786_v44 = vpack.c.bf16 %v3421_v47, %v3419_v28  ;;  %v3423_v55 = vpop.eup %3422 }
 0x3ff   : > { %3424 = vtanh.f32 %v1295_v56  ;;  %1905 = vmatmul.bf16.gmra.mxu0 %v1786_v44  ;;  %v3070_v56 = vld [vmem:[%s4918_s2 + $0x128] sm:$0xff] }
 0x400   : > { %3426 = vtanh.f32 %v1580_v49  ;;  %2216 = vmatpush.bf16.msrb.mxu1 %v3070_v56 }
 0x401   : > { %1336 = vmatmul.bf16.gmra.mxu2 %v1141_v5 }
 0x403   : > { %v1581_v51 = vpop.f32.mrf.mxu3 }
 0x404   : > { %v1582_v60 = vadd.f32 %v4408_v6, %v1581_v51  ;;  %v1297_v62 = vpop.f32.mrf.mxu2  ;;  %v3069_v51 = vld [vmem:[%s4918_s2 + $0x120] sm:$0xff] }
 0x405   : > { %v3425_v53 = vpop.eup %3424  ;;  %v1298_v58 = vadd.f32 %v4334_v37, %v1297_v62  ;;  %2217 = vmatpush.bf16.msrb.mxu1 %v3069_v51  ;;  %v3068_v62 = vld [vmem:[%s4918_s2 + $0x118] sm:$0xff] }
 0x406   : > { %3428 = vtanh.f32 %v1582_v60  ;;  %v1464_v4 = vpack.c.bf16 %v3425_v53, %v3423_v55  ;;  %v3427_v43 = vpop.eup %3426 }
 0x407   : > { %3430 = vtanh.f32 %v1298_v58 }
 0x408   : > { %1623 = vmatmul.bf16.gmra.mxu3 %v1464_v4 }
 0x409   : > { %2218 = vmatpush.bf16.msrb.mxu1 %v3068_v62 }
 0x40b   : > { %v1584_v63 = vpop.f32.mrf.mxu3 }
 0x40c   : > { %v3429_v3 = vpop.eup %3428  ;;  %v1299_v5 = vpop.f32.mrf.mxu2  ;;  %v1585_v45 = vadd.f32 %v4408_v6, %v1584_v63  ;;  %v3067_v63 = vld [vmem:[%s4918_s2 + $0x110] sm:$0xff] }
 0x40d   : > { %v1300_v31 = vadd.f32 %v4334_v37, %v1299_v5  ;;  %v1787_v52 = vpack.c.bf16 %v3429_v3, %v3427_v43  ;;  %v3431_v25 = vpop.eup %3430  ;;  %2219 = vmatpush.bf16.msrb.mxu1 %v3067_v63 }
 0x40f   : > { %3432 = vtanh.f32 %v1300_v31  ;;  %1910 = vmatmul.bf16.gmra.mxu0 %v1787_v52 }
 0x410   : > { %3434 = vtanh.f32 %v1585_v45 }
 0x411   : > { %1341 = vmatmul.bf16.gmra.mxu2 %v1142_v16  ;;  %2220 = vmatpush.bf16.msrb.mxu1 %v3066_v57 }
 0x413   : > { %v1586_v19 = vpop.f32.mrf.mxu3 }
 0x414   : > { %v1587_v27 = vadd.f32 %v4408_v6, %v1586_v19  ;;  %v1302_v18 = vpop.f32.mrf.mxu2  ;;  %v3065_v19 = vld [vmem:[%s4918_s2 + $0x100] sm:$0xff] }
 0x415   : > { %v3433_v46 = vpop.eup %3432  ;;  %v1303_v22 = vadd.f32 %v4334_v37, %v1302_v18  ;;  %2221 = vmatpush.bf16.msrb.mxu1 %v3065_v19 }
 0x416   : > { %3436 = vtanh.f32 %v1587_v27  ;;  %v1465_v1 = vpack.c.bf16 %v3433_v46, %v3431_v25  ;;  %v3435_v17 = vpop.eup %3434 }
 0x417   : > { %3438 = vtanh.f32 %v1303_v22 }
 0x418   : > { %1628 = vmatmul.bf16.gmra.mxu3 %v1465_v1 }
 0x41b   : > { %v1589_v36 = vpop.f32.mrf.mxu3 }
 0x41c   : > { %v3437_v15 = vpop.eup %3436  ;;  %v1304_v30 = vpop.f32.mrf.mxu2  ;;  %v1590_v13 = vadd.f32 %v4408_v6, %v1589_v36 }
 0x41d   : > { %v1305_v8 = vadd.f32 %v4334_v37, %v1304_v30  ;;  %v1788_v10 = vpack.c.bf16 %v3437_v15, %v3435_v17  ;;  %v3439_v21 = vpop.eup %3438 }
 0x41f   : > { %3440 = vtanh.f32 %v1305_v8  ;;  %1915 = vmatmul.bf16.gmra.mxu0 %v1788_v10 }
 0x420   : > { %3442 = vtanh.f32 %v1590_v13 }
 0x421   : > { %1346 = vmatmul.bf16.gmra.mxu2 %v1143_v26 }
 0x423   : > { %v1591_v16 = vpop.f32.mrf.mxu3 }
 0x424   : > { %v1592_v28 = vadd.f32 %v4408_v6, %v1591_v16  ;;  %v1307_v59 = vpop.f32.mrf.mxu2 }
 0x425   : > { %v3441_v47 = vpop.eup %3440  ;;  %v1308_v44 = vadd.f32 %v4334_v37, %v1307_v59 }
 0x426   : > { %3444 = vtanh.f32 %v1592_v28  ;;  %v1466_v2 = vpack.c.bf16 %v3441_v47, %v3439_v21  ;;  %v3443_v49 = vpop.eup %3442 }
 0x427   : > { %3446 = vtanh.f32 %v1308_v44 }
 0x428   : > { %1633 = vmatmul.bf16.gmra.mxu3 %v1466_v2 }
 0x42b   : > { %v1594_v41 = vpop.f32.mrf.mxu3 }
 0x42c   : > { %v3445_v48 = vpop.eup %3444  ;;  %v1309_v26 = vpop.f32.mrf.mxu2  ;;  %v1595_v53 = vadd.f32 %v4408_v6, %v1594_v41 }
 0x42d   : > { %v1310_v55 = vadd.f32 %v4334_v37, %v1309_v26  ;;  %v1789_v60 = vpack.c.bf16 %v3445_v48, %v3443_v49  ;;  %v3447_v23 = vpop.eup %3446 }
 0x42f   : > { %3448 = vtanh.f32 %v1310_v55  ;;  %1920 = vmatmul.bf16.gmra.mxu0 %v1789_v60 }
 0x430   : > { %3450 = vtanh.f32 %v1595_v53 }
 0x431   : > { %1351 = vmatmul.bf16.gmra.mxu2 %v1144_v34 }
 0x433   : > { %v1596_v4 = vpop.f32.mrf.mxu3 }
 0x434   : > { %v1597_v58 = vadd.f32 %v4408_v6, %v1596_v4  ;;  %v1312_v43 = vpop.f32.mrf.mxu2 }
 0x435   : > { %v3449_v3 = vpop.eup %3448  ;;  %v1313_v0 = vadd.f32 %v4334_v37, %v1312_v43 }
 0x436   : > { %3452 = vtanh.f32 %v1597_v58  ;;  %v1467_v5 = vpack.c.bf16 %v3449_v3, %v3447_v23  ;;  %v3451_v34 = vpop.eup %3450 }
 0x437   : > { %3454 = vtanh.f32 %v1313_v0 }
 0x438   : > { %1638 = vmatmul.bf16.gmra.mxu3 %v1467_v5 }
 0x43b   : > { %v1599_v31 = vpop.f32.mrf.mxu3 }
 0x43c   : > { %v3453_v52 = vpop.eup %3452  ;;  %v1314_v45 = vpop.f32.mrf.mxu2  ;;  %v1600_v18 = vadd.f32 %v4408_v6, %v1599_v31 }
 0x43d   : > { %v1315_v25 = vadd.f32 %v4334_v37, %v1314_v45  ;;  %v1790_v27 = vpack.c.bf16 %v3453_v52, %v3451_v34  ;;  %v3455_v1 = vpop.eup %3454 }
 0x43f   : > { %3456 = vtanh.f32 %v1315_v25  ;;  %1925 = vmatmul.bf16.gmra.mxu0 %v1790_v27 }
 0x440   : > { %3458 = vtanh.f32 %v1600_v18 }
 0x441   : > { %1356 = vmatmul.bf16.gmra.mxu2 %v1145_v42  ;;  %v4498_v42 = vld [vmem:[%s4920_s4 + $0x4] ss:$0 sm:$0xff] }
 0x443   : > { %v1601_v46 = vpop.f32.mrf.mxu3 }
 0x444   : > { %v1602_v22 = vadd.f32 %v4408_v6, %v1601_v46  ;;  %v1317_v17 = vpop.f32.mrf.mxu2 }
 0x445   : > { %v3457_v36 = vpop.eup %3456  ;;  %v1318_v30 = vadd.f32 %v4334_v37, %v1317_v17 }
 0x446   : > { %3460 = vtanh.f32 %v1602_v22  ;;  %v1468_v15 = vpack.c.bf16 %v3457_v36, %v3455_v1  ;;  %v3459_v8 = vpop.eup %3458 }
 0x447   : > { %3462 = vtanh.f32 %v1318_v30 }
 0x448   : > { %1643 = vmatmul.bf16.gmra.mxu3 %v1468_v15 }
 0x44b   : > { %v1604_v10 = vpop.f32.mrf.mxu3 }
 0x44c   : > { %v3461_v13 = vpop.eup %3460  ;;  %v1319_v16 = vpop.f32.mrf.mxu2  ;;  %v1605_v28 = vadd.f32 %v4408_v6, %v1604_v10 }
 0x44d   : > { %v1891_v21 = vpop.f32.mrf.mxu0  ;;  %v1320_v12 = vadd.f32 %v4334_v37, %v1319_v16  ;;  %v1791_v39 = vpack.c.bf16 %v3461_v13, %v3459_v8  ;;  %v3463_v2 = vpop.eup %3462 }
 0x44e   : > { %v1892_v59 = vadd.f32 %v4498_v42, %v1891_v21 }
 0x44f   : > { %3464 = vtanh.f32 %v1320_v12  ;;  %1930 = vmatmul.bf16.gmra.mxu0 %v1791_v39 }
 0x450   : > { %3466 = vtanh.f32 %v1605_v28 }
 0x451   : > { %1361 = vmatmul.bf16.gmra.mxu2 %v1146_v54 }
 0x453   : > { %v1606_v47 = vpop.f32.mrf.mxu3 }
 0x454   : > { %v1607_v56 = vadd.f32 %v4408_v6, %v1606_v47  ;;  %v1322_v44 = vpop.f32.mrf.mxu2 }
 0x455   : > { %v1893_v49 = vpop.f32.mrf.mxu0  ;;  %v3465_v41 = vpop.eup %3464  ;;  %v1323_v24 = vadd.f32 %v4334_v37, %v1322_v44 }
 0x456   : > { %v1894_v48 = vadd.f32 %v4498_v42, %v1893_v49  ;;  %3468 = vtanh.f32 %v1607_v56  ;;  %v1469_v26 = vpack.c.bf16 %v3465_v41, %v3463_v2  ;;  %v3467_v32 = vpop.eup %3466 }
 0x457   : > { %3470 = vtanh.f32 %v1892_v59 }
 0x458   : > { %3472 = vtanh.f32 %v1894_v48  ;;  %1648 = vmatmul.bf16.gmra.mxu3 %v1469_v26 }
 0x459   : > { %3474 = vtanh.f32 %v1323_v24 }
 0x45b   : > { %v1609_v54 = vpop.f32.mrf.mxu3 }
 0x45c   : > { %v3469_v51 = vpop.eup %3468  ;;  %v1324_v55 = vpop.f32.mrf.mxu2  ;;  %v1610_v43 = vadd.f32 %v4408_v6, %v1609_v54 }
 0x45d   : > { %v1896_v60 = vpop.f32.mrf.mxu0  ;;  %v3471_v62 = vpop.eup %3470  ;;  %v1325_v53 = vadd.f32 %v4334_v37, %v1324_v55  ;;  %v1792_v4 = vpack.c.bf16 %v3469_v51, %v3467_v32 }
 0x45e   : > { %v3473_v23 = vpop.eup %3472  ;;  %v1897_v63 = vadd.f32 %v4498_v42, %v1896_v60 }
 0x45f   : > { %3476 = vtanh.f32 %v1325_v53  ;;  %1935 = vmatmul.bf16.gmra.mxu0 %v1792_v4  ;;  %v2115_v58 = vpack.c.bf16 %v3473_v23, %v3471_v62  ;;  %v3475_v5 = vpop.eup %3474 }
 0x460   : > { %3478 = vtanh.f32 %v1610_v43 }
 0x461   : > { %2222 = vmatmul.bf16.vlgmr.msrb.gmra.mxu1 %v2115_v58  ;;  %1366 = vmatmul.bf16.gmra.mxu2 %v1147_v7 }
 0x463   : > { %v1611_v3 = vpop.f32.mrf.mxu3 }
 0x464   : > { %v1612_v57 = vadd.f32 %v4408_v6, %v1611_v3  ;;  %v1327_v0 = vpop.f32.mrf.mxu2 }
 0x465   : > { %v1898_v34 = vpop.f32.mrf.mxu0  ;;  %v3477_v31 = vpop.eup %3476  ;;  %v1328_v40 = vadd.f32 %v4334_v37, %v1327_v0 }
 0x466   : > { %v1899_v52 = vadd.f32 %v4498_v42, %v1898_v34  ;;  %3480 = vtanh.f32 %v1612_v57  ;;  %v1470_v45 = vpack.c.bf16 %v3477_v31, %v3475_v5  ;;  %v3479_v50 = vpop.eup %3478 }
 0x467   : > { %3482 = vtanh.f32 %v1897_v63 }
 0x468   : > { %3484 = vtanh.f32 %v1899_v52  ;;  %1653 = vmatmul.bf16.gmra.mxu3 %v1470_v45 }
 0x469   : > { %3486 = vtanh.f32 %v1328_v40 }
 0x46b   : > { %v1614_v7 = vpop.f32.mrf.mxu3 }
 0x46c   : > { %v3481_v19 = vpop.eup %3480  ;;  %v1329_v25 = vpop.f32.mrf.mxu2  ;;  %v1615_v36 = vadd.f32 %v4408_v6, %v1614_v7 }
 0x46d   : > { %v1901_v27 = vpop.f32.mrf.mxu0  ;;  %v3483_v18 = vpop.eup %3482  ;;  %v1330_v46 = vadd.f32 %v4334_v37, %v1329_v25  ;;  %v1793_v1 = vpack.c.bf16 %v3481_v19, %v3479_v50 }
 0x46e   : > { %v3485_v22 = vpop.eup %3484  ;;  %v1902_v15 = vadd.f32 %v4498_v42, %v1901_v27 }
 0x46f   : > { %3488 = vtanh.f32 %v1330_v46  ;;  %1940 = vmatmul.bf16.gmra.mxu0 %v1793_v1  ;;  %v2116_v17 = vpack.c.bf16 %v3485_v22, %v3483_v18  ;;  %v3487_v8 = vpop.eup %3486 }
 0x470   : > { %3490 = vtanh.f32 %v1615_v36 }
 0x471   : > { %2227 = vmatmul.bf16.gmra.mxu1 %v2116_v17  ;;  %1371 = vmatmul.bf16.gmra.mxu2 %v1148_v14 }
 0x473   : > { %v1616_v30 = vpop.f32.mrf.mxu3 }
 0x474   : > { %v1617_v10 = vadd.f32 %v4408_v6, %v1616_v30  ;;  %v1332_v13 = vpop.f32.mrf.mxu2 }
 0x475   : > { %v1903_v16 = vpop.f32.mrf.mxu0  ;;  %v3489_v21 = vpop.eup %3488  ;;  %v1333_v29 = vadd.f32 %v4334_v37, %v1332_v13 }
 0x476   : > { %v1904_v12 = vadd.f32 %v4498_v42, %v1903_v16  ;;  %3492 = vtanh.f32 %v1617_v10  ;;  %v1471_v39 = vpack.c.bf16 %v3489_v21, %v3487_v8  ;;  %v3491_v61 = vpop.eup %3490 }
 0x477   : > { %3494 = vtanh.f32 %v1902_v15 }
 0x478   : > { %3496 = vtanh.f32 %v1904_v12  ;;  %1658 = vmatmul.bf16.gmra.mxu3 %v1471_v39 }
 0x479   : > { %3498 = vtanh.f32 %v1333_v29 }
 0x47b   : > { %v1619_v14 = vpop.f32.mrf.mxu3 }
 0x47c   : > { %v3493_v28 = vpop.eup %3492  ;;  %v1334_v59 = vpop.f32.mrf.mxu2  ;;  %v1620_v48 = vadd.f32 %v4408_v6, %v1619_v14 }
 0x47d   : > { %v1906_v47 = vpop.f32.mrf.mxu0  ;;  %v3495_v2 = vpop.eup %3494  ;;  %v1335_v56 = vadd.f32 %v4334_v37, %v1334_v59  ;;  %v1794_v44 = vpack.c.bf16 %v3493_v28, %v3491_v61 }
 0x47e   : > { %v3497_v49 = vpop.eup %3496  ;;  %v1907_v26 = vadd.f32 %v4498_v42, %v1906_v47 }
 0x47f   : > { %3500 = vtanh.f32 %v1335_v56  ;;  %1945 = vmatmul.bf16.gmra.mxu0 %v1794_v44  ;;  %v2117_v41 = vpack.c.bf16 %v3497_v49, %v3495_v2  ;;  %v3499_v32 = vpop.eup %3498 }
 0x480   : > { %3502 = vtanh.f32 %v1620_v48 }
 0x481   : > { %2232 = vmatmul.bf16.gmra.mxu1 %v2117_v41  ;;  %1376 = vmatmul.bf16.gmra.mxu2 %v1149_v11 }
 0x483   : > { %v1621_v24 = vpop.f32.mrf.mxu3 }
 0x484   : > { %v1622_v54 = vadd.f32 %v4408_v6, %v1621_v24  ;;  %v1337_v37 = vpop.f32.mrf.mxu2 }
 0x485   : > { %v1908_v51 = vpop.f32.mrf.mxu0  ;;  %v3501_v55 = vpop.eup %3500  ;;  %v1338_v9 = vadd.f32 %v4537_v20, %v1337_v37 }
 0x486   : > { %v1909_v60 = vadd.f32 %v4498_v42, %v1908_v51  ;;  %3504 = vtanh.f32 %v1622_v54  ;;  %v1472_v62 = vpack.c.bf16 %v3501_v55, %v3499_v32  ;;  %v3503_v11 = vpop.eup %3502 }
 0x487   : > { %3506 = vtanh.f32 %v1907_v26 }
 0x488   : > { %3508 = vtanh.f32 %v1909_v60  ;;  %1663 = vmatmul.bf16.gmra.mxu3 %v1472_v62 }
 0x489   : > { %3510 = vtanh.f32 %v1338_v9 }
 0x48b   : > { %v1624_v53 = vpop.f32.mrf.mxu3 }
 0x48c   : > { %v3505_v4 = vpop.eup %3504  ;;  %v1339_v23 = vpop.f32.mrf.mxu2  ;;  %v1625_v0 = vadd.f32 %v4408_v6, %v1624_v53 }
 0x48d   : > { %v1911_v58 = vpop.f32.mrf.mxu0  ;;  %v3507_v43 = vpop.eup %3506  ;;  %v1340_v63 = vadd.f32 %v4537_v20, %v1339_v23  ;;  %v1795_v3 = vpack.c.bf16 %v3505_v4, %v3503_v11 }
 0x48e   : > { %v3509_v5 = vpop.eup %3508  ;;  %v1912_v34 = vadd.f32 %v4498_v42, %v1911_v58 }
 0x48f   : > { %3512 = vtanh.f32 %v1340_v63  ;;  %1950 = vmatmul.bf16.gmra.mxu0 %v1795_v3  ;;  %v2118_v57 = vpack.c.bf16 %v3509_v5, %v3507_v43  ;;  %v3511_v52 = vpop.eup %3510 }
 0x490   : > { %3514 = vtanh.f32 %v1625_v0 }
 0x491   : > { %2237 = vmatmul.bf16.gmra.mxu1 %v2118_v57  ;;  %1381 = vmatmul.bf16.gmra.mxu2 %v1150_v38 }
 0x493   : > { %v1626_v31 = vpop.f32.mrf.mxu3 }
 0x494   : > { %v1627_v45 = vadd.f32 %v4408_v6, %v1626_v31  ;;  %v1342_v40 = vpop.f32.mrf.mxu2 }
 0x495   : > { %v1913_v50 = vpop.f32.mrf.mxu0  ;;  %v3513_v7 = vpop.eup %3512  ;;  %v1343_v33 = vadd.f32 %v4537_v20, %v1342_v40 }
 0x496   : > { %v1914_v19 = vadd.f32 %v4498_v42, %v1913_v50  ;;  %3516 = vtanh.f32 %v1627_v45  ;;  %v1473_v25 = vpack.c.bf16 %v3513_v7, %v3511_v52  ;;  %v3515_v35 = vpop.eup %3514 }
 0x497   : > { %3518 = vtanh.f32 %v1912_v34 }
 0x498   : > { %3520 = vtanh.f32 %v1914_v19  ;;  %1668 = vmatmul.bf16.gmra.mxu3 %v1473_v25 }
 0x499   : > { %3522 = vtanh.f32 %v1343_v33 }
 0x49b   : > { %v1629_v38 = vpop.f32.mrf.mxu3 }
 0x49c   : > { %v3517_v27 = vpop.eup %3516  ;;  %v1344_v18 = vpop.f32.mrf.mxu2  ;;  %v1630_v30 = vadd.f32 %v4408_v6, %v1629_v38 }
 0x49d   : > { %v1916_v46 = vpop.f32.mrf.mxu0  ;;  %v3519_v1 = vpop.eup %3518  ;;  %v1345_v22 = vadd.f32 %v4537_v20, %v1344_v18  ;;  %v1796_v17 = vpack.c.bf16 %v3517_v27, %v3515_v35 }
 0x49e   : > { %v3521_v36 = vpop.eup %3520  ;;  %v1917_v8 = vadd.f32 %v4498_v42, %v1916_v46 }
 0x49f   : > { %3524 = vtanh.f32 %v1345_v22  ;;  %1955 = vmatmul.bf16.gmra.mxu0 %v1796_v17  ;;  %v2119_v15 = vpack.c.bf16 %v3521_v36, %v3519_v1  ;;  %v3523_v13 = vpop.eup %3522 }
 0x4a0   : > { %3526 = vtanh.f32 %v1630_v30 }
 0x4a1   : > { %2242 = vmatmul.bf16.gmra.mxu1 %v2119_v15 }
 0x4a3   : > { %v1631_v10 = vpop.f32.mrf.mxu3 }
 0x4a4   : > { %v1632_v16 = vadd.f32 %v4408_v6, %v1631_v10  ;;  %v1347_v21 = vpop.f32.mrf.mxu2 }
 0x4a5   : > { %v1918_v12 = vpop.f32.mrf.mxu0  ;;  %v3525_v39 = vpop.eup %3524  ;;  %v1348_v14 = vadd.f32 %v4537_v20, %v1347_v21 }
 0x4a6   : > { %v1919_v29 = vadd.f32 %v4498_v42, %v1918_v12  ;;  %3528 = vtanh.f32 %v1632_v16  ;;  %v1474_v61 = vpack.c.bf16 %v3525_v39, %v3523_v13  ;;  %v3527_v28 = vpop.eup %3526 }
 0x4a7   : > { %3530 = vtanh.f32 %v1917_v8 }
 0x4a8   : > { %3532 = vtanh.f32 %v1919_v29  ;;  %1673 = vmatmul.bf16.gmra.mxu3 %v1474_v61 }
 0x4a9   : > { %3534 = vtanh.f32 %v1348_v14 }
 0x4ab   : > { %v1634_v59 = vpop.f32.mrf.mxu3 }
 0x4ac   : > { %v3529_v47 = vpop.eup %3528  ;;  %v1349_v2 = vpop.f32.mrf.mxu2  ;;  %v1635_v24 = vadd.f32 %v4408_v6, %v1634_v59 }
 0x4ad   : > { %v1921_v56 = vpop.f32.mrf.mxu0  ;;  %v3531_v44 = vpop.eup %3530  ;;  %v1350_v49 = vadd.f32 %v4537_v20, %v1349_v2  ;;  %v1797_v41 = vpack.c.bf16 %v3529_v47, %v3527_v28 }
 0x4ae   : > { %v3533_v48 = vpop.eup %3532  ;;  %v1922_v32 = vadd.f32 %v4498_v42, %v1921_v56 }
 0x4af   : > { %3536 = vtanh.f32 %v1350_v49  ;;  %1960 = vmatmul.bf16.gmra.mxu0 %v1797_v41  ;;  %v2120_v26 = vpack.c.bf16 %v3533_v48, %v3531_v44  ;;  %v3535_v37 = vpop.eup %3534 }
 0x4b0   : > { %3538 = vtanh.f32 %v1635_v24 }
 0x4b1   : > { %2247 = vmatmul.bf16.gmra.mxu1 %v2120_v26 }
 0x4b3   : > { %v1636_v54 = vpop.f32.mrf.mxu3 }
 0x4b4   : > { %v1637_v51 = vadd.f32 %v4408_v6, %v1636_v54  ;;  %v1352_v55 = vpop.f32.mrf.mxu2  ;;  %v4577_v54 = vld [vmem:[%s4920_s4 + $0x5] ss:$0 sm:$0xff] }
 0x4b5   : > { %v1923_v60 = vpop.f32.mrf.mxu0  ;;  %v3537_v62 = vpop.eup %3536  ;;  %v1353_v53 = vadd.f32 %v4537_v20, %v1352_v55 }
 0x4b6   : > { %v1924_v9 = vadd.f32 %v4498_v42, %v1923_v60  ;;  %3540 = vtanh.f32 %v1637_v51  ;;  %v1475_v11 = vpack.c.bf16 %v3537_v62, %v3535_v37  ;;  %v3539_v4 = vpop.eup %3538 }
 0x4b7   : > { %3542 = vtanh.f32 %v1922_v32 }
 0x4b8   : > { %3544 = vtanh.f32 %v1924_v9  ;;  %1678 = vmatmul.bf16.gmra.mxu3 %v1475_v11 }
 0x4b9   : > { %3546 = vtanh.f32 %v1353_v53 }
 0x4bb   : > { %v1639_v23 = vpop.f32.mrf.mxu3 }
 0x4bc   : > { %v3541_v58 = vpop.eup %3540  ;;  %v1354_v43 = vpop.f32.mrf.mxu2  ;;  %v1640_v31 = vadd.f32 %v4408_v6, %v1639_v23 }
 0x4bd   : > { %v1926_v63 = vpop.f32.mrf.mxu0  ;;  %v3543_v3 = vpop.eup %3542  ;;  %v1355_v5 = vadd.f32 %v4537_v20, %v1354_v43  ;;  %v1798_v57 = vpack.c.bf16 %v3541_v58, %v3539_v4 }
 0x4be   : > { %v3545_v0 = vpop.eup %3544  ;;  %v1927_v52 = vadd.f32 %v4498_v42, %v1926_v63 }
 0x4bf   : > { %3548 = vtanh.f32 %v1355_v5  ;;  %1965 = vmatmul.bf16.gmra.mxu0 %v1798_v57  ;;  %v2121_v34 = vpack.c.bf16 %v3545_v0, %v3543_v3  ;;  %v3547_v40 = vpop.eup %3546 }
 0x4c0   : > { %3550 = vtanh.f32 %v1640_v31 }
 0x4c1   : > { %2252 = vmatmul.bf16.gmra.mxu1 %v2121_v34 }
 0x4c3   : > { %v1641_v45 = vpop.f32.mrf.mxu3 }
 0x4c4   : > { %v1642_v50 = vadd.f32 %v4408_v6, %v1641_v45  ;;  %v1357_v7 = vpop.f32.mrf.mxu2 }
 0x4c5   : > { %v1928_v19 = vpop.f32.mrf.mxu0  ;;  %v3549_v25 = vpop.eup %3548  ;;  %v1358_v38 = vadd.f32 %v4537_v20, %v1357_v7 }
 0x4c6   : > { %v1929_v33 = vadd.f32 %v4498_v42, %v1928_v19  ;;  %3552 = vtanh.f32 %v1642_v50  ;;  %v1476_v35 = vpack.c.bf16 %v3549_v25, %v3547_v40  ;;  %v3551_v27 = vpop.eup %3550 }
 0x4c7   : > { %3554 = vtanh.f32 %v1927_v52 }
 0x4c8   : > { %3556 = vtanh.f32 %v1929_v33  ;;  %1683 = vmatmul.bf16.gmra.mxu3 %v1476_v35  ;;  %v4594_v35 = vld [vmem:[%s4920_s4 + $0x3] ss:$0 sm:$0xff] }
 0x4c9   : > { %3558 = vtanh.f32 %v1358_v38 }
 0x4cb   : > { %v1644_v18 = vpop.f32.mrf.mxu3 }
 0x4cc   : > { %v3553_v46 = vpop.eup %3552  ;;  %v1359_v1 = vpop.f32.mrf.mxu2  ;;  %v1645_v10 = vadd.f32 %v4408_v6, %v1644_v18 }
 0x4cd   : > { %v1931_v22 = vpop.f32.mrf.mxu0  ;;  %v3555_v17 = vpop.eup %3554  ;;  %v1360_v36 = vadd.f32 %v4537_v20, %v1359_v1  ;;  %v1799_v15 = vpack.c.bf16 %v3553_v46, %v3551_v27 }
 0x4ce   : > { %v3557_v30 = vpop.eup %3556  ;;  %v1932_v13 = vadd.f32 %v4498_v42, %v1931_v22 }
 0x4cf   : > { %3560 = vtanh.f32 %v1360_v36  ;;  %1970 = vmatmul.bf16.gmra.mxu0 %v1799_v15  ;;  %v2122_v8 = vpack.c.bf16 %v3557_v30, %v3555_v17  ;;  %v3559_v21 = vpop.eup %3558 }
 0x4d0   : > { %3562 = vtanh.f32 %v1645_v10 }
 0x4d1   : > { %2257 = vmatmul.bf16.gmra.mxu1 %v2122_v8 }
 0x4d3   : > { %v1646_v16 = vpop.f32.mrf.mxu3 }
 0x4d4   : > { %v1647_v12 = vadd.f32 %v4408_v6, %v1646_v16  ;;  %v1362_v39 = vpop.f32.mrf.mxu2 }
 0x4d5   : > { %v1933_v29 = vpop.f32.mrf.mxu0  ;;  %v3561_v61 = vpop.eup %3560  ;;  %v1363_v59 = vadd.f32 %v4537_v20, %v1362_v39 }
 0x4d6   : > { %v1934_v14 = vadd.f32 %v4498_v42, %v1933_v29  ;;  %3564 = vtanh.f32 %v1647_v12  ;;  %v1477_v28 = vpack.c.bf16 %v3561_v61, %v3559_v21  ;;  %v3563_v47 = vpop.eup %3562 }
 0x4d7   : > { %3566 = vtanh.f32 %v1932_v13 }
 0x4d8   : > { %3568 = vtanh.f32 %v1934_v14  ;;  %1688 = vmatmul.bf16.gmra.mxu3 %v1477_v28 }
 0x4d9   : > { %3570 = vtanh.f32 %v1363_v59 }
 0x4db   : > { %v1649_v2 = vpop.f32.mrf.mxu3 }
 0x4dc   : > { %v3565_v56 = vpop.eup %3564  ;;  %v1364_v44 = vpop.f32.mrf.mxu2  ;;  %v1650_v51 = vadd.f32 %v4408_v6, %v1649_v2 }
 0x4dd   : > { %v1936_v49 = vpop.f32.mrf.mxu0  ;;  %v3567_v41 = vpop.eup %3566  ;;  %v1365_v48 = vadd.f32 %v4537_v20, %v1364_v44  ;;  %v1800_v26 = vpack.c.bf16 %v3565_v56, %v3563_v47 }
 0x4de   : > { %v3569_v24 = vpop.eup %3568  ;;  %v2223_v32 = vpop.f32.mrf.mxu1  ;;  %v1937_v55 = vadd.f32 %v4498_v42, %v1936_v49 }
 0x4df   : > { %3572 = vtanh.f32 %v1365_v48  ;;  %1975 = vmatmul.bf16.gmra.mxu0 %v1800_v26  ;;  %v2123_v37 = vpack.c.bf16 %v3569_v24, %v3567_v41  ;;  %v2224_v60 = vadd.f32 %v4577_v54, %v2223_v32  ;;  %v3571_v9 = vpop.eup %3570 }
 0x4e0   : > { %3574 = vtanh.f32 %v1650_v51 }
 0x4e1   : > { %2262 = vmatmul.bf16.gmra.mxu1 %v2123_v37  ;;  %3576 = vtanh.f32 %v1937_v55 }
 0x4e3   : > { %v1651_v62 = vpop.f32.mrf.mxu3 }
 0x4e4   : > { %v1652_v11 = vadd.f32 %v4408_v6, %v1651_v62  ;;  %v1367_v53 = vpop.f32.mrf.mxu2 }
 0x4e5   : > { %v1938_v4 = vpop.f32.mrf.mxu0  ;;  %v3573_v23 = vpop.eup %3572  ;;  %v1368_v57 = vadd.f32 %v4537_v20, %v1367_v53 }
 0x4e6   : > { %v1939_v58 = vadd.f32 %v4498_v42, %v1938_v4  ;;  %3578 = vtanh.f32 %v1652_v11  ;;  %v2225_v43 = vpop.f32.mrf.mxu1  ;;  %v1478_v63 = vpack.c.bf16 %v3573_v23, %v3571_v9  ;;  %v3575_v5 = vpop.eup %3574 }
 0x4e7   : > { %3580 = vtanh.f32 %v2224_v60  ;;  %v2226_v3 = vadd.f32 %v4577_v54, %v2225_v43  ;;  %v3577_v0 = vpop.eup %3576 }
 0x4e8   : > { %3582 = vtanh.f32 %v1939_v58  ;;  %1693 = vmatmul.bf16.gmra.mxu3 %v1478_v63 }
 0x4e9   : > { %3584 = vtanh.f32 %v2226_v3 }
 0x4ea   : > { %3586 = vtanh.f32 %v1368_v57 }
 0x4eb   : > { %v1654_v6 = vpop.f32.mrf.mxu3 }
 0x4ec   : > { %v3579_v34 = vpop.eup %3578  ;;  %v1369_v31 = vpop.f32.mrf.mxu2  ;;  %v1655_v38 = vadd.f32 %v4594_v35, %v1654_v6 }
 0x4ed   : > { %v1941_v52 = vpop.f32.mrf.mxu0  ;;  %v4586_v45 = vpop.eup %3580  ;;  %v1370_v40 = vadd.f32 %v4537_v20, %v1369_v31  ;;  %v1801_v50 = vpack.c.bf16 %v3579_v34, %v3575_v5 }
 0x4ee   : > { %v3583_v7 = vpop.eup %3582  ;;  %v2228_v19 = vpop.f32.mrf.mxu1  ;;  %v1942_v18 = vadd.f32 %v4498_v42, %v1941_v52 }
 0x4ef   : > { %v4589_v25 = vpop.eup %3584  ;;  %3588 = vtanh.f32 %v1370_v40  ;;  %1980 = vmatmul.bf16.gmra.mxu0 %v1801_v50  ;;  %v2124_v33 = vpack.c.bf16 %v3583_v7, %v3577_v0  ;;  %v2229_v46 = vadd.f32 %v4577_v54, %v2228_v19 }
 0x4f0   : > { %v2448_v27 = vpack.c.bf16 %v4589_v25, %v4586_v45  ;;  %v3587_v22 = vpop.eup %3586  ;;  %3590 = vtanh.f32 %v1655_v38 }
 0x4f1   : > { %2267 = vmatmul.bf16.gmra.mxu1 %v2124_v33  ;;  %3592 = vtanh.f32 %v1942_v18 }
 0x4f3   : > { %v1656_v1 = vpop.f32.mrf.mxu3 }
 0x4f4   : > { %v1657_v17 = vadd.f32 %v4594_v35, %v1656_v1  ;;  %v1372_v36 = vpop.f32.mrf.mxu2 }
 0x4f5   : > { %v1943_v15 = vpop.f32.mrf.mxu0  ;;  %v3589_v30 = vpop.eup %3588  ;;  %v1373_v12 = vadd.f32 %v4537_v20, %v1372_v36 }
 0x4f6   : > { %v1944_v8 = vadd.f32 %v4498_v42, %v1943_v15  ;;  %3594 = vtanh.f32 %v1657_v17  ;;  %v2230_v10 = vpop.f32.mrf.mxu1  ;;  %v1479_v13 = vpack.c.bf16 %v3589_v30, %v3587_v22  ;;  %v3591_v21 = vpop.eup %3590 }
 0x4f7   : > { %3596 = vtanh.f32 %v2229_v46  ;;  %v2231_v16 = vadd.f32 %v4577_v54, %v2230_v10  ;;  %v3593_v39 = vpop.eup %3592 }
 0x4f8   : > { %3598 = vtanh.f32 %v1944_v8  ;;  %1698 = vmatmul.bf16.gmra.mxu3 %v1479_v13 }
 0x4f9   : > { %3600 = vtanh.f32 %v2231_v16 }
 0x4fa   : > { %3602 = vtanh.f32 %v1373_v12 }
 0x4fb   : > { %v1659_v29 = vpop.f32.mrf.mxu3 }
 0x4fc   : > { %v3595_v61 = vpop.eup %3594  ;;  %v1374_v14 = vpop.f32.mrf.mxu2  ;;  %v1660_v48 = vadd.f32 %v4594_v35, %v1659_v29 }
 0x4fd   : > { %v1946_v28 = vpop.f32.mrf.mxu0  ;;  %v4605_v59 = vpop.eup %3596  ;;  %v1375_v47 = vadd.f32 %v4537_v20, %v1374_v14  ;;  %v1802_v2 = vpack.c.bf16 %v3595_v61, %v3591_v21 }
 0x4fe   : > { %v3599_v56 = vpop.eup %3598  ;;  %v2233_v44 = vpop.f32.mrf.mxu1  ;;  %v1947_v24 = vadd.f32 %v4498_v42, %v1946_v28 }
 0x4ff   : > { %v4608_v49 = vpop.eup %3600  ;;  %3604 = vtanh.f32 %v1375_v47  ;;  %1985 = vmatmul.bf16.gmra.mxu0 %v1802_v2  ;;  %v2125_v41 = vpack.c.bf16 %v3599_v56, %v3593_v39  ;;  %v2234_v32 = vadd.f32 %v4577_v54, %v2233_v44 }
 0x500   : > { %v2449_v26 = vpack.c.bf16 %v4608_v49, %v4605_v59  ;;  %v3603_v51 = vpop.eup %3602  ;;  %3606 = vtanh.f32 %v1660_v48 }
 0x501   : > { %2272 = vmatmul.bf16.gmra.mxu1 %v2125_v41  ;;  %3608 = vtanh.f32 %v1947_v24 }
 0x503   : > { %v1661_v37 = vpop.f32.mrf.mxu3 }
 0x504   : > { %v1662_v55 = vadd.f32 %v4594_v35, %v1661_v37  ;;  %v1377_v60 = vpop.f32.mrf.mxu2 }
 0x505   : > { %v1948_v62 = vpop.f32.mrf.mxu0  ;;  %v3605_v9 = vpop.eup %3604  ;;  %v1378_v43 = vadd.f32 %v4537_v20, %v1377_v60 }
 0x506   : > { %v1949_v11 = vadd.f32 %v4498_v42, %v1948_v62  ;;  %3610 = vtanh.f32 %v1662_v55  ;;  %v2235_v53 = vpop.f32.mrf.mxu1  ;;  %v1480_v4 = vpack.c.bf16 %v3605_v9, %v3603_v51  ;;  %v3607_v58 = vpop.eup %3606 }
 0x507   : > { %3612 = vtanh.f32 %v2234_v32  ;;  %v2236_v23 = vadd.f32 %v4577_v54, %v2235_v53  ;;  %v3609_v63 = vpop.eup %3608 }
 0x508   : > { %3614 = vtanh.f32 %v1949_v11  ;;  %1703 = vmatmul.bf16.gmra.mxu3 %v1480_v4 }
 0x509   : > { %3616 = vtanh.f32 %v2236_v23 }
 0x50a   : > { %3618 = vtanh.f32 %v1378_v43 }
 0x50b   : > { %v1664_v3 = vpop.f32.mrf.mxu3 }
 0x50c   : > { %v3611_v5 = vpop.eup %3610  ;;  %v1379_v57 = vpop.f32.mrf.mxu2  ;;  %v1665_v19 = vadd.f32 %v4594_v35, %v1664_v3 }
 0x50d   : > { %v1951_v0 = vpop.f32.mrf.mxu0  ;;  %v4619_v6 = vpop.eup %3612  ;;  %v1380_v34 = vadd.f32 %v4537_v20, %v1379_v57  ;;  %v1803_v31 = vpack.c.bf16 %v3611_v5, %v3607_v58 }
 0x50e   : > { %v3615_v52 = vpop.eup %3614  ;;  %v2238_v40 = vpop.f32.mrf.mxu1  ;;  %v1952_v38 = vadd.f32 %v4498_v42, %v1951_v0 }
 0x50f   : > { %v4622_v50 = vpop.eup %3616  ;;  %3620 = vtanh.f32 %v1380_v34  ;;  %1990 = vmatmul.bf16.gmra.mxu0 %v1803_v31  ;;  %v2126_v7 = vpack.c.bf16 %v3615_v52, %v3609_v63  ;;  %v2239_v18 = vadd.f32 %v4577_v54, %v2238_v40 }
 0x510   : > { %v2450_v33 = vpack.c.bf16 %v4622_v50, %v4619_v6  ;;  %v3619_v1 = vpop.eup %3618  ;;  %3622 = vtanh.f32 %v1665_v19 }
 0x511   : > { %2277 = vmatmul.bf16.gmra.mxu1 %v2126_v7  ;;  %3624 = vtanh.f32 %v1952_v38 }
 0x513   : > { %v1666_v46 = vpop.f32.mrf.mxu3 }
 0x514   : > { %v1667_v22 = vadd.f32 %v4594_v35, %v1666_v46  ;;  %v1382_v17 = vpop.f32.mrf.mxu2 }
 0x515   : > { %v1953_v36 = vpop.f32.mrf.mxu0  ;;  %v3621_v15 = vpop.eup %3620  ;;  %v1383_v21 = vadd.f32 %v4537_v20, %v1382_v17 }
 0x516   : > { %v1954_v30 = vadd.f32 %v4498_v42, %v1953_v36  ;;  %3626 = vtanh.f32 %v1667_v22  ;;  %v2240_v8 = vpop.f32.mrf.mxu1  ;;  %v1481_v10 = vpack.c.bf16 %v3621_v15, %v3619_v1  ;;  %v3623_v16 = vpop.eup %3622 }
 0x517   : > { %3628 = vtanh.f32 %v2239_v18  ;;  %v2241_v13 = vadd.f32 %v4577_v54, %v2240_v8  ;;  %v3625_v12 = vpop.eup %3624 }
 0x518   : > { %3630 = vtanh.f32 %v1954_v30  ;;  %1708 = vmatmul.bf16.gmra.mxu3 %v1481_v10 }
 0x519   : > { %3632 = vtanh.f32 %v2241_v13 }
 0x51a   : > { %3634 = vtanh.f32 %v1383_v21 }
 0x51b   : > { %v1669_v39 = vpop.f32.mrf.mxu3 }
 0x51c   : > { %v3627_v29 = vpop.eup %3626  ;;  %v1384_v61 = vpop.f32.mrf.mxu2  ;;  %v1670_v24 = vadd.f32 %v4594_v35, %v1669_v39 }
 0x51d   : > { %v1956_v14 = vpop.f32.mrf.mxu0  ;;  %v4633_v28 = vpop.eup %3628  ;;  %v1385_v47 = vadd.f32 %v4537_v20, %v1384_v61  ;;  %v1804_v2 = vpack.c.bf16 %v3627_v29, %v3623_v16 }
 0x51e   : > { %v3631_v56 = vpop.eup %3630  ;;  %v2243_v44 = vpop.f32.mrf.mxu1  ;;  %v1957_v37 = vadd.f32 %v4498_v42, %v1956_v14 }
 0x51f   : > { %v4636_v41 = vpop.eup %3632  ;;  %3636 = vtanh.f32 %v1385_v47  ;;  %1995 = vmatmul.bf16.gmra.mxu0 %v1804_v2  ;;  %v2127_v48 = vpack.c.bf16 %v3631_v56, %v3625_v12  ;;  %v2244_v20 = vadd.f32 %v4577_v54, %v2243_v44 }
 0x520   : > { %v2451_v32 = vpack.c.bf16 %v4636_v41, %v4633_v28  ;;  %v3635_v55 = vpop.eup %3634  ;;  %3638 = vtanh.f32 %v1670_v24 }
 0x521   : > { %2282 = vmatmul.bf16.gmra.mxu1 %v2127_v48  ;;  %3640 = vtanh.f32 %v1957_v37 }
 0x523   : > { %v1671_v51 = vpop.f32.mrf.mxu3 }
 0x524   : > { %v1672_v60 = vadd.f32 %v4594_v35, %v1671_v51 }
 0x525   : > { %v1958_v62 = vpop.f32.mrf.mxu0  ;;  %v3637_v9 = vpop.eup %3636 }
 0x526   : > { %v1959_v11 = vadd.f32 %v4498_v42, %v1958_v62  ;;  %3642 = vtanh.f32 %v1672_v60  ;;  %v2245_v53 = vpop.f32.mrf.mxu1  ;;  %v1482_v4 = vpack.c.bf16 %v3637_v9, %v3635_v55  ;;  %v3639_v58 = vpop.eup %3638 }
 0x527   : > { %v2246_v23 = vadd.f32 %v4577_v54, %v2245_v53  ;;  %v3641_v43 = vpop.eup %3640 }
 0x528   : > { %3644 = vtanh.f32 %v1959_v11  ;;  %1713 = vmatmul.bf16.gmra.mxu3 %v1482_v4  ;;  %v4668_v11 = vld [vmem:[%s4920_s4 + $0x4] ss:$0 sm:$0xff] }
 0x529   : > { %3646 = vtanh.f32 %v2244_v20 }
 0x52a   : > { %3648 = vtanh.f32 %v2246_v23 }
 0x52b   : > { %v1674_v63 = vpop.f32.mrf.mxu3 }
 0x52c   : > { %v3643_v3 = vpop.eup %3642  ;;  %v1675_v7 = vadd.f32 %v4594_v35, %v1674_v63 }
 0x52d   : > { %v1961_v5 = vpop.f32.mrf.mxu0  ;;  %v1805_v0 = vpack.c.bf16 %v3643_v3, %v3639_v58 }
 0x52e   : > { %v3645_v57 = vpop.eup %3644  ;;  %v4648_v31 = vpop.f32.mrf.mxu1  ;;  %v1962_v38 = vadd.f32 %v4498_v42, %v1961_v5  ;;  %3650 = vtanh.f32 %v1675_v7 }
 0x52f   : > { %v4646_v34 = vpop.eup %3646  ;;  %v2128_v52 = vpack.c.bf16 %v3645_v57, %v3641_v43  ;;  %2000 = vmatmul.bf16.gmra.mxu0 %v1805_v0 }
 0x530   : > { %v4650_v40 = vpop.eup %3648  ;;  %3652 = vtanh.f32 %v1962_v38 }
 0x531   : > { %v2452_v19 = vpack.c.bf16 %v4650_v40, %v4646_v34  ;;  %2287 = vmatmul.bf16.gmra.mxu1 %v2128_v52 }
 0x533   : > { %v1676_v18 = vpop.f32.mrf.mxu3 }
 0x534   : > { %v1677_v46 = vadd.f32 %v4594_v35, %v1676_v18  ;;  %v3651_v36 = vpop.eup %3650 }
 0x535   : > { %v1963_v1 = vpop.f32.mrf.mxu0 }
 0x536   : > { %v1964_v22 = vadd.f32 %v4498_v42, %v1963_v1  ;;  %3654 = vtanh.f32 %v1677_v46  ;;  %v4658_v17 = vpop.f32.mrf.mxu1  ;;  %v3653_v15 = vpop.eup %3652 }
 0x538   : > { %3656 = vtanh.f32 %v1964_v22 }
 0x53b   : > { %v1679_v30 = vpop.f32.mrf.mxu3 }
 0x53c   : > { %v3655_v8 = vpop.eup %3654  ;;  %v1680_v39 = vadd.f32 %v4594_v35, %v1679_v30 }
 0x53d   : > { %v1966_v10 = vpop.f32.mrf.mxu0  ;;  %v1806_v16 = vpack.c.bf16 %v3655_v8, %v3651_v36  ;;  %v2249_v36 = vadd.f32 %v4577_v54, %v4648_v31 }
 0x53e   : > { %v3657_v13 = vpop.eup %3656  ;;  %v2253_v21 = vpop.f32.mrf.mxu1  ;;  %v1967_v29 = vadd.f32 %v4498_v42, %v1966_v10  ;;  %3658 = vtanh.f32 %v1680_v39  ;;  %v2251_v10 = vadd.f32 %v4577_v54, %v4658_v17 }
 0x53f   : > { %v2129_v12 = vpack.c.bf16 %v3657_v13, %v3653_v15  ;;  %2005 = vmatmul.bf16.gmra.mxu0 %v1806_v16  ;;  %v2254_v46 = vadd.f32 %v4577_v54, %v2253_v21 }
 0x540   : > { %3660 = vtanh.f32 %v1967_v29 }
 0x541   : > { %2292 = vmatmul.bf16.gmra.mxu1 %v2129_v12 }
 0x543   : > { %v1681_v61 = vpop.f32.mrf.mxu3 }
 0x544   : > { %v1682_v14 = vadd.f32 %v4594_v35, %v1681_v61  ;;  %v3659_v44 = vpop.eup %3658 }
 0x545   : > { %v1968_v47 = vpop.f32.mrf.mxu0 }
 0x546   : > { %v1969_v2 = vadd.f32 %v4498_v42, %v1968_v47  ;;  %3662 = vtanh.f32 %v1682_v14  ;;  %v2255_v56 = vpop.f32.mrf.mxu1  ;;  %v3661_v48 = vpop.eup %3660 }
 0x547   : > { %v2256_v0 = vadd.f32 %v4577_v54, %v2255_v56 }
 0x548   : > { %3664 = vtanh.f32 %v1969_v2 }
 0x54b   : > { %v1684_v24 = vpop.f32.mrf.mxu3 }
 0x54c   : > { %v3663_v37 = vpop.eup %3662  ;;  %v1685_v9 = vadd.f32 %v4594_v35, %v1684_v24 }
 0x54d   : > { %v1971_v51 = vpop.f32.mrf.mxu0  ;;  %v1807_v20 = vpack.c.bf16 %v3663_v37, %v3659_v44 }
 0x54e   : > { %v3665_v55 = vpop.eup %3664  ;;  %v2258_v60 = vpop.f32.mrf.mxu1  ;;  %v1972_v42 = vadd.f32 %v4668_v11, %v1971_v51  ;;  %3666 = vtanh.f32 %v1685_v9 }
 0x54f   : > { %v2130_v62 = vpack.c.bf16 %v3665_v55, %v3661_v48  ;;  %2010 = vmatmul.bf16.gmra.mxu0 %v1807_v20  ;;  %v2259_v4 = vadd.f32 %v4577_v54, %v2258_v60 }
 0x550   : > { %3668 = vtanh.f32 %v1972_v42 }
 0x551   : > { %2297 = vmatmul.bf16.gmra.mxu1 %v2130_v62 }
 0x553   : > { %v1686_v53 = vpop.f32.mrf.mxu3 }
 0x554   : > { %v1687_v23 = vadd.f32 %v4594_v35, %v1686_v53  ;;  %v3667_v5 = vpop.eup %3666 }
 0x555   : > { %v1973_v58 = vpop.f32.mrf.mxu0 }
 0x556   : > { %v1974_v43 = vadd.f32 %v4668_v11, %v1973_v58  ;;  %3670 = vtanh.f32 %v1687_v23  ;;  %v2260_v63 = vpop.f32.mrf.mxu1  ;;  %v3669_v57 = vpop.eup %3668 }
 0x557   : > { %v2261_v3 = vadd.f32 %v4577_v54, %v2260_v63 }
 0x558   : > { %3672 = vtanh.f32 %v1974_v43 }
 0x559   : > { %3674 = vtanh.f32 %v2259_v4 }
 0x55a   : > { %3676 = vtanh.f32 %v2261_v3 }
 0x55b   : > { %v1689_v52 = vpop.f32.mrf.mxu3  ;;  %3678 = vtanh.f32 %v2256_v0 }
 0x55c   : > { %v3671_v7 = vpop.eup %3670  ;;  %v1690_v13 = vadd.f32 %v4594_v35, %v1689_v52  ;;  %3680 = vtanh.f32 %v2254_v46 }
 0x55d   : > { %v1976_v38 = vpop.f32.mrf.mxu0  ;;  %v1808_v1 = vpack.c.bf16 %v3671_v7, %v3667_v5  ;;  %3682 = vtanh.f32 %v2249_v36 }
 0x55e   : > { %v3673_v18 = vpop.eup %3672  ;;  %v2263_v15 = vpop.f32.mrf.mxu1  ;;  %v1977_v12 = vadd.f32 %v4668_v11, %v1976_v38  ;;  %3684 = vtanh.f32 %v2251_v10 }
 0x55f   : > { %v3675_v22 = vpop.eup %3674  ;;  %v2131_v30 = vpack.c.bf16 %v3673_v18, %v3669_v57  ;;  %2015 = vmatmul.bf16.gmra.mxu0 %v1808_v1  ;;  %3686 = vtanh.f32 %v1690_v13  ;;  %v2264_v31 = vadd.f32 %v4577_v54, %v2263_v15 }
 0x560   : > { %v3677_v8 = vpop.eup %3676  ;;  %3688 = vtanh.f32 %v1977_v12 }
 0x561   : > { %v2455_v16 = vpack.c.bf16 %v3677_v8, %v3675_v22  ;;  %2302 = vmatmul.bf16.gmra.mxu1 %v2131_v30  ;;  %v3679_v17 = vpop.eup %3678 }
 0x562   : > { %v3681_v47 = vpop.eup %3680 }
 0x563   : > { %2486 = vmatpush.bf16.xpose.msra.mxu2 %v2455_v16  ;;  %v1691_v21 = vpop.f32.mrf.mxu3  ;;  %v3683_v56 = vpop.eup %3682  ;;  %v2454_v44 = vpack.c.bf16 %v3679_v17, %v3681_v47 }
 0x564   : > { %v1692_v39 = vadd.f32 %v4594_v35, %v1691_v21  ;;  %v3685_v48 = vpop.eup %3684 }
 0x565   : > { %v1978_v29 = vpop.f32.mrf.mxu0  ;;  %v3687_v24 = vpop.eup %3686  ;;  %v2453_v58 = vpack.c.bf16 %v3685_v48, %v3683_v56 }
 0x566   : > { %v1979_v61 = vadd.f32 %v4668_v11, %v1978_v29  ;;  %3690 = vtanh.f32 %v1692_v39  ;;  %v2265_v14 = vpop.f32.mrf.mxu1  ;;  %v3689_v37 = vpop.eup %3688 }
 0x567   : > { %v2266_v2 = vadd.f32 %v4577_v54, %v2265_v14 }
 0x568   : > { %3692 = vtanh.f32 %v1979_v61 }
 0x569   : > { %3694 = vtanh.f32 %v2264_v31 }
 0x56a   : > { %3696 = vtanh.f32 %v2266_v2 }
 0x56b   : > { %2487 = vmatpush.bf16.xpose.msra.mxu2 %v2454_v44  ;;  %v1694_v51 = vpop.f32.mrf.mxu3 }
 0x56c   : > { %v3691_v55 = vpop.eup %3690  ;;  %v1695_v23 = vadd.f32 %v4594_v35, %v1694_v51 }
 0x56d   : > { %v1981_v20 = vpop.f32.mrf.mxu0  ;;  %v1809_v62 = vpack.c.bf16 %v3691_v55, %v3687_v24 }
 0x56e   : > { %v3693_v60 = vpop.eup %3692  ;;  %v2268_v42 = vpop.f32.mrf.mxu1  ;;  %v1982_v63 = vadd.f32 %v4668_v11, %v1981_v20  ;;  %3698 = vtanh.f32 %v1695_v23 }
 0x56f   : > { %v4687_v9 = vpop.eup %3694  ;;  %v2132_v53 = vpack.c.bf16 %v3693_v60, %v3689_v37  ;;  %2020 = vmatmul.bf16.gmra.mxu0 %v1809_v62  ;;  %v2269_v5 = vadd.f32 %v4577_v54, %v2268_v42 }
 0x570   : > { %v4689_v4 = vpop.eup %3696  ;;  %3700 = vtanh.f32 %v1982_v63 }
 0x571   : > { %v2456_v43 = vpack.c.bf16 %v4689_v4, %v4687_v9  ;;  %2307 = vmatmul.bf16.gmra.mxu1 %v2132_v53 }
 0x573   : > { %2488 = vmatpush.bf16.xpose.msra.mxu2 %v2453_v58  ;;  %v1696_v3 = vpop.f32.mrf.mxu3 }
 0x574   : > { %v1697_v57 = vadd.f32 %v4594_v35, %v1696_v3  ;;  %v3699_v18 = vpop.eup %3698 }
 0x575   : > { %v1983_v0 = vpop.f32.mrf.mxu0 }
 0x576   : > { %v1984_v52 = vadd.f32 %v4668_v11, %v1983_v0  ;;  %3702 = vtanh.f32 %v1697_v57  ;;  %v2270_v7 = vpop.f32.mrf.mxu1  ;;  %v3701_v46 = vpop.eup %3700 }
 0x577   : > { %v2271_v38 = vadd.f32 %v4577_v54, %v2270_v7 }
 0x578   : > { %3704 = vtanh.f32 %v1984_v52 }
 0x579   : > { %3706 = vtanh.f32 %v2269_v5 }
 0x57a   : > { %3708 = vtanh.f32 %v2271_v38 }
 0x57b   : > { %2489 = vmatpush.bf16.xpose.msra.mxu2 %v2452_v19  ;;  %v1699_v1 = vpop.f32.mrf.mxu3 }
 0x57c   : > { %v3703_v22 = vpop.eup %3702  ;;  %v1700_v12 = vadd.f32 %v4594_v35, %v1699_v1 }
 0x57d   : > { %v1986_v36 = vpop.f32.mrf.mxu0  ;;  %v1810_v30 = vpack.c.bf16 %v3703_v22, %v3699_v18 }
 0x57e   : > { %v3705_v15 = vpop.eup %3704  ;;  %v2273_v10 = vpop.f32.mrf.mxu1  ;;  %v1987_v34 = vadd.f32 %v4668_v11, %v1986_v36  ;;  %3710 = vtanh.f32 %v1700_v12 }
 0x57f   : > { %v4702_v8 = vpop.eup %3706  ;;  %v2133_v13 = vpack.c.bf16 %v3705_v15, %v3701_v46  ;;  %2025 = vmatmul.bf16.gmra.mxu0 %v1810_v30  ;;  %v2274_v19 = vadd.f32 %v4577_v54, %v2273_v10 }
 0x580   : > { %v4704_v16 = vpop.eup %3708  ;;  %3712 = vtanh.f32 %v1987_v34 }
 0x581   : > { %v2457_v21 = vpack.c.bf16 %v4704_v16, %v4702_v8  ;;  %2312 = vmatmul.bf16.gmra.mxu1 %v2133_v13 }
 0x583   : > { %2490 = vmatpush.bf16.xpose.msra.mxu2 %v2451_v32  ;;  %v1701_v40 = vpop.f32.mrf.mxu3 }
 0x584   : > { %v1702_v31 = vadd.f32 %v4594_v35, %v1701_v40  ;;  %v3711_v14 = vpop.eup %3710 }
 0x585   : > { %v1988_v39 = vpop.f32.mrf.mxu0 }
 0x586   : > { %v1989_v29 = vadd.f32 %v4668_v11, %v1988_v39  ;;  %3714 = vtanh.f32 %v1702_v31  ;;  %v2275_v17 = vpop.f32.mrf.mxu1  ;;  %v3713_v28 = vpop.eup %3712 }
 0x587   : > { %v2276_v61 = vadd.f32 %v4577_v54, %v2275_v17 }
 0x588   : > { %3716 = vtanh.f32 %v1989_v29 }
 0x589   : > { %3718 = vtanh.f32 %v2274_v19 }
 0x58a   : > { %3720 = vtanh.f32 %v2276_v61 }
 0x58b   : > { %2491 = vmatpush.bf16.xpose.msra.mxu2 %v2450_v33  ;;  %v1704_v41 = vpop.f32.mrf.mxu3 }
 0x58c   : > { %v3715_v32 = vpop.eup %3714  ;;  %v1705_v51 = vadd.f32 %v4594_v35, %v1704_v41 }
 0x58d   : > { %v1991_v47 = vpop.f32.mrf.mxu0  ;;  %v1811_v56 = vpack.c.bf16 %v3715_v32, %v3711_v14 }
 0x58e   : > { %v3717_v2 = vpop.eup %3716  ;;  %v2278_v48 = vpop.f32.mrf.mxu1  ;;  %v1992_v6 = vadd.f32 %v4668_v11, %v1991_v47  ;;  %3722 = vtanh.f32 %v1705_v51 }
 0x58f   : > { %v4720_v44 = vpop.eup %3718  ;;  %v2134_v24 = vpack.c.bf16 %v3717_v2, %v3713_v28  ;;  %2030 = vmatmul.bf16.gmra.mxu0 %v1811_v56  ;;  %v2279_v33 = vadd.f32 %v4577_v54, %v2278_v48 }
 0x590   : > { %v4722_v37 = vpop.eup %3720  ;;  %3724 = vtanh.f32 %v1992_v6 }
 0x591   : > { %v2458_v55 = vpack.c.bf16 %v4722_v37, %v4720_v44  ;;  %2317 = vmatmul.bf16.gmra.mxu1 %v2134_v24 }
 0x593   : > { %2492 = vmatpush.bf16.xpose.msra.mxu2 %v2449_v26  ;;  %v1706_v50 = vpop.f32.mrf.mxu3 }
 0x594   : > { %v1707_v20 = vadd.f32 %v4594_v35, %v1706_v50  ;;  %v3723_v23 = vpop.eup %3722 }
 0x595   : > { %v1993_v60 = vpop.f32.mrf.mxu0 }
 0x596   : > { %v1994_v62 = vadd.f32 %v4668_v11, %v1993_v60  ;;  %3726 = vtanh.f32 %v1707_v20  ;;  %v2280_v42 = vpop.f32.mrf.mxu1  ;;  %v3725_v59 = vpop.eup %3724 }
 0x597   : > { %v2281_v53 = vadd.f32 %v4577_v54, %v2280_v42 }
 0x598   : > { %3728 = vtanh.f32 %v1994_v62 }
 0x599   : > { %3730 = vtanh.f32 %v2279_v33 }
 0x59a   : > { %3732 = vtanh.f32 %v2281_v53 }
 0x59b   : > { %2493 = vmatpush.bf16.xpose.msra.mxu2 %v2448_v27  ;;  %v1709_v49 = vpop.f32.mrf.mxu3 }
 0x59c   : > { %v3727_v26 = vpop.eup %3726  ;;  %v1710_v7 = vadd.f32 %v4594_v35, %v1709_v49 }
 0x59d   : > { %v1996_v58 = vpop.f32.mrf.mxu0  ;;  %v1812_v3 = vpack.c.bf16 %v3727_v26, %v3723_v23 }
 0x59e   : > { %v3729_v63 = vpop.eup %3728  ;;  %v2283_v57 = vpop.f32.mrf.mxu1  ;;  %v1997_v45 = vadd.f32 %v4668_v11, %v1996_v58  ;;  %3734 = vtanh.f32 %v1710_v7 }
 0x59f   : > { %v4738_v5 = vpop.eup %3730  ;;  %v2135_v0 = vpack.c.bf16 %v3729_v63, %v3725_v59  ;;  %2035 = vmatmul.bf16.gmra.mxu0 %v1812_v3  ;;  %v2284_v27 = vadd.f32 %v4577_v54, %v2283_v57 }
 0x5a0   : > { %v4740_v52 = vpop.eup %3732  ;;  %3736 = vtanh.f32 %v1997_v45 }
 0x5a1   : > { %v2459_v38 = vpack.c.bf16 %v4740_v52, %v4738_v5  ;;  %2322 = vmatmul.bf16.gmra.mxu1 %v2135_v0 }
 0x5a3   : > { %v1711_v25 = vpop.f32.mrf.mxu3 }
 0x5a4   : > { %v1712_v18 = vadd.f32 %v4594_v35, %v1711_v25  ;;  %v3735_v15 = vpop.eup %3734 }
 0x5a5   : > { %v1998_v46 = vpop.f32.mrf.mxu0 }
 0x5a6   : > { %v1999_v1 = vadd.f32 %v4668_v11, %v1998_v46  ;;  %3738 = vtanh.f32 %v1712_v18  ;;  %v2285_v22 = vpop.f32.mrf.mxu1  ;;  %v3737_v30 = vpop.eup %3736 }
 0x5a7   : > { %v2286_v36 = vadd.f32 %v4577_v54, %v2285_v22 }
 0x5a8   : > { %3740 = vtanh.f32 %v1999_v1 }
 0x5a9   : > { %3742 = vtanh.f32 %v2284_v27 }
 0x5aa   : > { %3744 = vtanh.f32 %v2286_v36 }
 0x5ab   : > { %v1714_v10 = vpop.f32.mrf.mxu3 }
 0x5ac   : > { %v3739_v13 = vpop.eup %3738  ;;  %v1715_v17 = vadd.f32 %v4594_v35, %v1714_v10 }
 0x5ad   : > { %v2001_v12 = vpop.f32.mrf.mxu0  ;;  %v1813_v40 = vpack.c.bf16 %v3739_v13, %v3735_v15 }
 0x5ae   : > { %v3741_v34 = vpop.eup %3740  ;;  %v2288_v31 = vpop.f32.mrf.mxu1  ;;  %v2002_v14 = vadd.f32 %v4668_v11, %v2001_v12  ;;  %3746 = vtanh.f32 %v1715_v17 }
 0x5af   : > { %v4750_v19 = vpop.eup %3742  ;;  %v2136_v39 = vpack.c.bf16 %v3741_v34, %v3737_v30  ;;  %2040 = vmatmul.bf16.gmra.mxu0 %v1813_v40  ;;  %v2289_v30 = vadd.f32 %v4577_v54, %v2288_v31 }
 0x5b0   : > { %v4752_v29 = vpop.eup %3744  ;;  %3748 = vtanh.f32 %v2002_v14 }
 0x5b1   : > { %v2460_v61 = vpack.c.bf16 %v4752_v29, %v4750_v19  ;;  %2327 = vmatmul.bf16.gmra.mxu1 %v2136_v39 }
 0x5b3   : > { %v1716_v28 = vpop.f32.mrf.mxu3 }
 0x5b4   : > { %v1717_v41 = vadd.f32 %v4594_v35, %v1716_v28  ;;  %v3747_v56 = vpop.eup %3746 }
 0x5b5   : > { %v2003_v32 = vpop.f32.mrf.mxu0 }
 0x5b6   : > { %v2004_v47 = vadd.f32 %v4668_v11, %v2003_v32  ;;  %3750 = vtanh.f32 %v1717_v41  ;;  %v2290_v2 = vpop.f32.mrf.mxu1  ;;  %v3749_v48 = vpop.eup %3748 }
 0x5b7   : > { %v2291_v13 = vadd.f32 %v4577_v54, %v2290_v2 }
 0x5b8   : > { %3752 = vtanh.f32 %v2004_v47 }
 0x5bc   : > { %v3751_v24 = vpop.eup %3750 }
 0x5bd   : > { %v2006_v51 = vpop.f32.mrf.mxu0  ;;  %v1814_v50 = vpack.c.bf16 %v3751_v24, %v3747_v56 }
 0x5be   : > { %v3753_v6 = vpop.eup %3752  ;;  %v2293_v33 = vpop.f32.mrf.mxu1  ;;  %v2007_v60 = vadd.f32 %v4668_v11, %v2006_v51 }
 0x5bf   : > { %v2137_v20 = vpack.c.bf16 %v3753_v6, %v3749_v48  ;;  %2045 = vmatmul.bf16.gmra.mxu0 %v1814_v50  ;;  %v2294_v46 = vadd.f32 %v4577_v54, %v2293_v33 }
 0x5c0   : > { %3754 = vtanh.f32 %v2007_v60  ;;  %v4784_v60 = vld [vmem:[%s4920_s4 + $0x5] ss:$0 sm:$0xff] }
 0x5c1   : > { %2332 = vmatmul.bf16.gmra.mxu1 %v2137_v20 }
 0x5c5   : > { %v2008_v35 = vpop.f32.mrf.mxu0 }
 0x5c6   : > { %v2009_v62 = vadd.f32 %v4668_v11, %v2008_v35  ;;  %v2295_v42 = vpop.f32.mrf.mxu1  ;;  %v3755_v53 = vpop.eup %3754 }
 0x5c7   : > { %v2296_v45 = vadd.f32 %v4577_v54, %v2295_v42 }
 0x5c8   : > { %3756 = vtanh.f32 %v2009_v62 }
 0x5cd   : > { %v2011_v23 = vpop.f32.mrf.mxu0 }
 0x5ce   : > { %v3757_v59 = vpop.eup %3756  ;;  %v2298_v49 = vpop.f32.mrf.mxu1  ;;  %v2012_v58 = vadd.f32 %v4668_v11, %v2011_v23 }
 0x5cf   : > { %v2138_v26 = vpack.c.bf16 %v3757_v59, %v3755_v53  ;;  %v2299_v63 = vadd.f32 %v4577_v54, %v2298_v49 }
 0x5d0   : > { %3758 = vtanh.f32 %v2012_v58 }
 0x5d1   : > { %2337 = vmatmul.bf16.gmra.mxu1 %v2138_v26 }
 0x5d5   : > { %v2013_v3 = vpop.f32.mrf.mxu0 }
 0x5d6   : > { %v2014_v57 = vadd.f32 %v4668_v11, %v2013_v3  ;;  %v2300_v0 = vpop.f32.mrf.mxu1  ;;  %v3759_v25 = vpop.eup %3758 }
 0x5d7   : > { %v2301_v7 = vadd.f32 %v4577_v54, %v2300_v0 }
 0x5d8   : > { %3760 = vtanh.f32 %v2014_v57 }
 0x5d9   : > { %3762 = vtanh.f32 %v2299_v63 }
 0x5da   : > { %3764 = vtanh.f32 %v2301_v7 }
 0x5db   : > { %3766 = vtanh.f32 %v2296_v45 }
 0x5dc   : > { %3768 = vtanh.f32 %v2294_v46 }
 0x5dd   : > { %v2016_v27 = vpop.f32.mrf.mxu0  ;;  %3770 = vtanh.f32 %v2289_v30 }
 0x5de   : > { %v3761_v18 = vpop.eup %3760  ;;  %v2303_v22 = vpop.f32.mrf.mxu1  ;;  %v2017_v12 = vadd.f32 %v4668_v11, %v2016_v27  ;;  %3772 = vtanh.f32 %v2291_v13 }
 0x5df   : > { %v3763_v1 = vpop.eup %3762  ;;  %v2139_v36 = vpack.c.bf16 %v3761_v18, %v3759_v25  ;;  %v2304_v34 = vadd.f32 %v4577_v54, %v2303_v22 }
 0x5e0   : > { %v3765_v15 = vpop.eup %3764  ;;  %3774 = vtanh.f32 %v2017_v12 }
 0x5e1   : > { %v2463_v10 = vpack.c.bf16 %v3765_v15, %v3763_v1  ;;  %2342 = vmatmul.bf16.gmra.mxu1 %v2139_v36  ;;  %v3767_v39 = vpop.eup %3766 }
 0x5e2   : > { %v3769_v28 = vpop.eup %3768 }
 0x5e3   : > { %2499 = vmatpush.bf16.xpose.msra.mxu3 %v2463_v10  ;;  %v2462_v41 = vpack.c.bf16 %v3767_v39, %v3769_v28  ;;  %v3771_v32 = vpop.eup %3770 }
 0x5e4   : > { %v3773_v47 = vpop.eup %3772 }
 0x5e5   : > { %v2018_v40 = vpop.f32.mrf.mxu0  ;;  %v2461_v33 = vpack.c.bf16 %v3773_v47, %v3771_v32 }
 0x5e6   : > { %v2019_v17 = vadd.f32 %v4668_v11, %v2018_v40  ;;  %v2305_v14 = vpop.f32.mrf.mxu1  ;;  %v3775_v2 = vpop.eup %3774 }
 0x5e7   : > { %v2306_v31 = vadd.f32 %v4577_v54, %v2305_v14 }
 0x5e8   : > { %3776 = vtanh.f32 %v2019_v17 }
 0x5e9   : > { %3778 = vtanh.f32 %v2304_v34 }
 0x5ea   : > { %3780 = vtanh.f32 %v2306_v31 }
 0x5eb   : > { %2500 = vmatpush.bf16.xpose.msra.mxu3 %v2462_v41 }
 0x5ed   : > { %v2021_v56 = vpop.f32.mrf.mxu0 }
 0x5ee   : > { %v3777_v48 = vpop.eup %3776  ;;  %v2308_v51 = vpop.f32.mrf.mxu1  ;;  %v2022_v54 = vadd.f32 %v4668_v11, %v2021_v56 }
 0x5ef   : > { %v4774_v24 = vpop.eup %3778  ;;  %v2140_v6 = vpack.c.bf16 %v3777_v48, %v3775_v2  ;;  %v2309_v35 = vadd.f32 %v4784_v60, %v2308_v51 }
 0x5f0   : > { %v4776_v50 = vpop.eup %3780  ;;  %3782 = vtanh.f32 %v2022_v54 }
 0x5f1   : > { %v2464_v20 = vpack.c.bf16 %v4776_v50, %v4774_v24  ;;  %2347 = vmatmul.bf16.gmra.mxu1 %v2140_v6 }
 0x5f3   : > { %2501 = vmatpush.bf16.xpose.msra.mxu3 %v2461_v33 }
 0x5f5   : > { %v2023_v62 = vpop.f32.mrf.mxu0 }
 0x5f6   : > { %v2024_v42 = vadd.f32 %v4668_v11, %v2023_v62  ;;  %v2310_v53 = vpop.f32.mrf.mxu1  ;;  %v3783_v59 = vpop.eup %3782 }
 0x5f7   : > { %v2311_v23 = vadd.f32 %v4784_v60, %v2310_v53 }
 0x5f8   : > { %3784 = vtanh.f32 %v2024_v42 }
 0x5f9   : > { %3786 = vtanh.f32 %v2309_v35 }
 0x5fa   : > { %3788 = vtanh.f32 %v2311_v23 }
 0x5fb   : > { %2502 = vmatpush.bf16.xpose.msra.mxu3 %v2460_v61 }
 0x5fd   : > { %v2026_v49 = vpop.f32.mrf.mxu0 }
 0x5fe   : > { %v3785_v26 = vpop.eup %3784  ;;  %v2313_v63 = vpop.f32.mrf.mxu1  ;;  %v2027_v7 = vadd.f32 %v4668_v11, %v2026_v49 }
 0x5ff   : > { %v4792_v58 = vpop.eup %3786  ;;  %v2141_v3 = vpack.c.bf16 %v3785_v26, %v3783_v59  ;;  %v2314_v19 = vadd.f32 %v4784_v60, %v2313_v63 }
 0x600   : > { %v4794_v57 = vpop.eup %3788  ;;  %3790 = vtanh.f32 %v2027_v7 }
 0x601   : > { %v2465_v0 = vpack.c.bf16 %v4794_v57, %v4792_v58  ;;  %2352 = vmatmul.bf16.gmra.mxu1 %v2141_v3 }
 0x603   : > { %2503 = vmatpush.bf16.xpose.msra.mxu3 %v2459_v38 }
 0x605   : > { %v2028_v29 = vpop.f32.mrf.mxu0 }
 0x606   : > { %v2029_v61 = vadd.f32 %v4668_v11, %v2028_v29  ;;  %v2315_v45 = vpop.f32.mrf.mxu1  ;;  %v3791_v27 = vpop.eup %3790 }
 0x607   : > { %v2316_v25 = vadd.f32 %v4784_v60, %v2315_v45 }
 0x608   : > { %3792 = vtanh.f32 %v2029_v61 }
 0x609   : > { %3794 = vtanh.f32 %v2314_v19 }
 0x60a   : > { %3796 = vtanh.f32 %v2316_v25 }
 0x60b   : > { %2504 = vmatpush.bf16.xpose.msra.mxu3 %v2458_v55 }
 0x60d   : > { %v2031_v18 = vpop.f32.mrf.mxu0 }
 0x60e   : > { %v3793_v5 = vpop.eup %3792  ;;  %v2318_v38 = vpop.f32.mrf.mxu1  ;;  %v2032_v36 = vadd.f32 %v4668_v11, %v2031_v18 }
 0x60f   : > { %v4808_v52 = vpop.eup %3794  ;;  %v2142_v46 = vpack.c.bf16 %v3793_v5, %v3791_v27  ;;  %v2319_v44 = vadd.f32 %v4784_v60, %v2318_v38 }
 0x610   : > { %v4810_v1 = vpop.eup %3796  ;;  %3798 = vtanh.f32 %v2032_v36 }
 0x611   : > { %v2466_v22 = vpack.c.bf16 %v4810_v1, %v4808_v52  ;;  %2357 = vmatmul.bf16.gmra.mxu1 %v2142_v46 }
 0x613   : > { %2505 = vmatpush.bf16.xpose.msra.mxu3 %v2457_v21 }
 0x615   : > { %v2033_v37 = vpop.f32.mrf.mxu0 }
 0x616   : > { %v2034_v55 = vadd.f32 %v4668_v11, %v2033_v37  ;;  %v2320_v15 = vpop.f32.mrf.mxu1  ;;  %v3799_v10 = vpop.eup %3798 }
 0x617   : > { %v2321_v30 = vadd.f32 %v4784_v60, %v2320_v15 }
 0x618   : > { %3800 = vtanh.f32 %v2034_v55 }
 0x619   : > { %3802 = vtanh.f32 %v2319_v44 }
 0x61a   : > { %3804 = vtanh.f32 %v2321_v30 }
 0x61b   : > { %2506 = vmatpush.bf16.xpose.msra.mxu3 %v2456_v43 }
 0x61d   : > { %v2036_v13 = vpop.f32.mrf.mxu0 }
 0x61e   : > { %v3801_v8 = vpop.eup %3800  ;;  %v2323_v21 = vpop.f32.mrf.mxu1  ;;  %v2037_v39 = vadd.f32 %v4668_v11, %v2036_v13 }
 0x61f   : > { %v4824_v16 = vpop.eup %3802  ;;  %v2143_v12 = vpack.c.bf16 %v3801_v8, %v3799_v10  ;;  %v2324_v17 = vadd.f32 %v4784_v60, %v2323_v21 }
 0x620   : > { %v4826_v34 = vpop.eup %3804  ;;  %3806 = vtanh.f32 %v2037_v39 }
 0x621   : > { %v2467_v40 = vpack.c.bf16 %v4826_v34, %v4824_v16  ;;  %2362 = vmatmul.bf16.gmra.mxu1 %v2143_v12 }
 0x625   : > { %v2038_v14 = vpop.f32.mrf.mxu0 }
 0x626   : > { %v2039_v9 = vadd.f32 %v4668_v11, %v2038_v14  ;;  %v2325_v4 = vpop.f32.mrf.mxu1  ;;  %v3807_v28 = vpop.eup %3806 }
 0x627   : > { %v2326_v43 = vadd.f32 %v4784_v60, %v2325_v4 }
 0x628   : > { %3808 = vtanh.f32 %v2039_v9 }
 0x629   : > { %3810 = vtanh.f32 %v2324_v17 }
 0x62a   : > { %3812 = vtanh.f32 %v2326_v43 }
 0x62d   : > { %v2041_v31 = vpop.f32.mrf.mxu0 }
 0x62e   : > { %v3809_v41 = vpop.eup %3808  ;;  %v2328_v47 = vpop.f32.mrf.mxu1  ;;  %v2042_v51 = vadd.f32 %v4668_v11, %v2041_v31 }
 0x62f   : > { %v4834_v32 = vpop.eup %3810  ;;  %v2144_v2 = vpack.c.bf16 %v3809_v41, %v3807_v28  ;;  %v2329_v36 = vadd.f32 %v4784_v60, %v2328_v47 }
 0x630   : > { %v4836_v56 = vpop.eup %3812  ;;  %3814 = vtanh.f32 %v2042_v51 }
 0x631   : > { %v2468_v48 = vpack.c.bf16 %v4836_v56, %v4834_v32  ;;  %2367 = vmatmul.bf16.gmra.mxu1 %v2144_v2 }
 0x635   : > { %v2043_v6 = vpop.f32.mrf.mxu0 }
 0x636   : > { %v2044_v33 = vadd.f32 %v4668_v11, %v2043_v6  ;;  %v2330_v54 = vpop.f32.mrf.mxu1  ;;  %v3815_v35 = vpop.eup %3814 }
 0x637   : > { %v2331_v44 = vadd.f32 %v4784_v60, %v2330_v54 }
 0x638   : > { %3816 = vtanh.f32 %v2044_v33 }
 0x63d   : > { %v2046_v62 = vpop.f32.mrf.mxu0 }
 0x63e   : > { %v3817_v42 = vpop.eup %3816  ;;  %v2333_v53 = vpop.f32.mrf.mxu1  ;;  %v2047_v59 = vadd.f32 %v4668_v11, %v2046_v62 }
 0x63f   : > { %v2145_v23 = vpack.c.bf16 %v3817_v42, %v3815_v35  ;;  %v2334_v18 = vadd.f32 %v4784_v60, %v2333_v53 }
 0x640   : > { %3818 = vtanh.f32 %v2047_v59 }
 0x641   : > { %2372 = vmatmul.bf16.gmra.mxu1 %v2145_v23 }
 0x645   : > { %v2048_v49 = vpop.f32.mrf.mxu0 }
 0x646   : > { %v2049_v26 = vadd.f32 %v4668_v11, %v2048_v49  ;;  %v2335_v63 = vpop.f32.mrf.mxu1  ;;  %v3819_v3 = vpop.eup %3818 }
 0x647   : > { %v2336_v27 = vadd.f32 %v4784_v60, %v2335_v63 }
 0x648   : > { %3820 = vtanh.f32 %v2049_v26 }
 0x64e   : > { %v3821_v7 = vpop.eup %3820  ;;  %v2338_v19 = vpop.f32.mrf.mxu1 }
 0x64f   : > { %v2146_v29 = vpack.c.bf16 %v3821_v7, %v3819_v3  ;;  %v2339_v61 = vadd.f32 %v4784_v60, %v2338_v19 }
 0x651   : > { %2377 = vmatmul.bf16.gmra.mxu1 %v2146_v29  ;;  %3822 = vtanh.f32 %v2339_v61 }
 0x656   : > { %v2340_v45 = vpop.f32.mrf.mxu1 }
 0x657   : > { %v2341_v25 = vadd.f32 %v4784_v60, %v2340_v45  ;;  %v3823_v11 = vpop.eup %3822 }
 0x659   : > { %3824 = vtanh.f32 %v2341_v25 }
 0x65a   : > { %3826 = vtanh.f32 %v2336_v27 }
 0x65b   : > { %3828 = vtanh.f32 %v2334_v18 }
 0x65c   : > { %3830 = vtanh.f32 %v2329_v36 }
 0x65d   : > { %3832 = vtanh.f32 %v2331_v44  ;;  %v3879_v44 = vmov 0  }
 0x65e   : > { %v2343_v5 = vpop.f32.mrf.mxu1  ;;  %3091 = vset.pattern.permute.xlu0 %v3879_v44 }
 0x65f   : > { %v3825_v38 = vpop.eup %3824  ;;  %v2344_v37 = vadd.f32 %v4784_v60, %v2343_v5  ;;  %v2447_v5 = vld [vmem:[%s4919_s3] sm:$0x1] }
 0x660   : > { %v2471_v46 = vpack.c.bf16 %v3825_v38, %v3823_v11  ;;  %v3827_v55 = vpop.eup %3826  ;;  %2494 = vmatmul.bf16.vlgmr.msra.gmra.mxu2 %v2447_v5  ;;  %2507 = vmatmul.bf16.vlgmr.msra.gmra.mxu3 %v2447_v5 }
 0x661   : > { %v3829_v30 = vpop.eup %3828  ;;  %3834 = vtanh.f32 %v2344_v37 }
 0x662   : > { %2512 = vmatpush.bf16.xpose.msrb.mxu2 %v2471_v46  ;;  %v2470_v13 = vpack.c.bf16 %v3827_v55, %v3829_v30  ;;  %v3831_v8 = vpop.eup %3830 }
 0x663   : > { %v3833_v21 = vpop.eup %3832 }
 0x664   : > { %v2469_v14 = vpack.c.bf16 %v3833_v21, %v3831_v8 }
 0x666   : > { %v2345_v15 = vpop.f32.mrf.mxu1 }
 0x667   : > { %v2346_v10 = vadd.f32 %v4784_v60, %v2345_v15  ;;  %v4852_v12 = vpop.eup %3834 }
 0x669   : > { %3836 = vtanh.f32 %v2346_v10 }
 0x66a   : > { %2513 = vmatpush.bf16.xpose.msrb.mxu2 %v2470_v13 }
 0x66e   : > { %v2348_v39 = vpop.f32.mrf.mxu1 }
 0x66f   : > { %v4854_v17 = vpop.eup %3836  ;;  %v2349_v4 = vadd.f32 %v4784_v60, %v2348_v39 }
 0x670   : > { %v2472_v9 = vpack.c.bf16 %v4854_v17, %v4852_v12 }
 0x671   : > { %3838 = vtanh.f32 %v2349_v4  ;;  %v2552_v4 = vlaneseq }
 0x672   : > { %2514 = vmatpush.bf16.xpose.msrb.mxu2 %v2469_v14 }
 0x673   : > { %vm2554_vm5 = vcmp.lt.s32.totalorder %v2552_v4, 512 }
 0x676   : > { %v2350_v43 = vpop.f32.mrf.mxu1 }
 0x677   : > { %v2351_v28 = vadd.f32 %v4784_v60, %v2350_v43  ;;  %v4863_v31 = vpop.eup %3838 }
 0x679   : > { %3840 = vtanh.f32 %v2351_v28 }
 0x67a   : > { %2515 = vmatpush.bf16.xpose.msrb.mxu2 %v2468_v48 }
 0x67e   : > { %v2353_v41 = vpop.f32.mrf.mxu1 }
 0x67f   : > { %v4865_v47 = vpop.eup %3840  ;;  %v2354_v51 = vadd.f32 %v4784_v60, %v2353_v41 }
 0x680   : > { %v2473_v2 = vpack.c.bf16 %v4865_v47, %v4863_v31 }
 0x681   : > { %3842 = vtanh.f32 %v2354_v51 }
 0x682   : > { %2516 = vmatpush.bf16.xpose.msrb.mxu2 %v2467_v40 }
 0x686   : > { %v2355_v6 = vpop.f32.mrf.mxu1 }
 0x687   : > { %v2356_v33 = vadd.f32 %v4784_v60, %v2355_v6  ;;  %v4877_v32 = vpop.eup %3842 }
 0x689   : > { %3844 = vtanh.f32 %v2356_v33 }
 0x68a   : > { %2517 = vmatpush.bf16.xpose.msrb.mxu2 %v2466_v22 }
 0x68e   : > { %v2358_v56 = vpop.f32.mrf.mxu1 }
 0x68f   : > { %v3845_v48 = vpop.eup %3844  ;;  %v2359_v16 = vadd.f32 %v4784_v60, %v2358_v56 }
 0x690   : > { %v2474_v54 = vpack.c.bf16 %v3845_v48, %v4877_v32 }
 0x691   : > { %3846 = vtanh.f32 %v2359_v16 }
 0x692   : > { %2518 = vmatpush.bf16.xpose.msrb.mxu2 %v2465_v0 }
 0x696   : > { %v2360_v34 = vpop.f32.mrf.mxu1 }
 0x697   : > { %v2361_v40 = vadd.f32 %v4784_v60, %v2360_v34  ;;  %v3847_v52 = vpop.eup %3846 }
 0x699   : > { %3848 = vtanh.f32 %v2361_v40 }
 0x69a   : > { %2519 = vmatpush.bf16.xpose.msrb.mxu2 %v2464_v20 }
 0x69e   : > { %v2363_v1 = vpop.f32.mrf.mxu1 }
 0x69f   : > { %v3849_v22 = vpop.eup %3848  ;;  %v2364_v62 = vadd.f32 %v4784_v60, %v2363_v1 }
 0x6a0   : > { %v2475_v35 = vpack.c.bf16 %v3849_v22, %v3847_v52 }
 0x6a1   : > { %3850 = vtanh.f32 %v2364_v62  ;;  %2520 = vmatmul.bf16.vlgmr.msrb.gmra.mxu2 %v2447_v5 }
 0x6a6   : > { %v2365_v42 = vpop.f32.mrf.mxu1 }
 0x6a7   : > { %v2366_v58 = vadd.f32 %v4784_v60, %v2365_v42  ;;  %v3851_v57 = vpop.eup %3850 }
 0x6a9   : > { %3852 = vtanh.f32 %v2366_v58 }
 0x6ae   : > { %v2368_v0 = vpop.f32.mrf.mxu1 }
 0x6af   : > { %v3853_v53 = vpop.eup %3852  ;;  %v2369_v27 = vadd.f32 %v4784_v60, %v2368_v0 }
 0x6b0   : > { %v2476_v23 = vpack.c.bf16 %v3853_v53, %v3851_v57 }
 0x6b6   : > { %v2370_v59 = vpop.f32.mrf.mxu1 }
 0x6b7   : > { %v2371_v45 = vadd.f32 %v4784_v60, %v2370_v59 }
 0x6be   : > { %v2373_v49 = vpop.f32.mrf.mxu1 }
 0x6bf   : > { %v2374_v7 = vadd.f32 %v4784_v60, %v2373_v49 }
 0x6c6   : > { %v2375_v26 = vpop.f32.mrf.mxu1 }
 0x6c7   : > { %v2376_v3 = vadd.f32 %v4784_v60, %v2375_v26 }
 0x6ce   : > { %v2378_v24 = vpop.f32.mrf.mxu1 }
 0x6cf   : > { %v2379_v50 = vadd.f32 %v4784_v60, %v2378_v24 }
 0x6d1   : > { %3854 = vtanh.f32 %v2379_v50 }
 0x6d6   : > { %v2380_v20 = vpop.f32.mrf.mxu1 }
 0x6d7   : > { %v2381_v63 = vadd.f32 %v4784_v60, %v2380_v20  ;;  %v3855_v19 = vpop.eup %3854  ;;  %v2480_v60 = vld [vmem:[%s4920_s4 + $0x6] sm:$0x1] }
 0x6d8   : > { %2483 = vperm.xlu0 %3091, %v2480_v60  }
 0x6d9   : > { %3856 = vtanh.f32 %v2381_v63 }
 0x6da   : > { %3858 = vtanh.f32 %v2376_v3 }
 0x6db   : > { %3860 = vtanh.f32 %v2374_v7 }
 0x6dc   : > { %3862 = vtanh.f32 %v2371_v45 }
 0x6dd   : > { %3864 = vtanh.f32 %v2369_v27 }
 0x6df   : > { %v3857_v29 = vpop.eup %3856 }
 0x6e0   : > { %v2479_v61 = vpack.c.bf16 %v3857_v29, %v3855_v19  ;;  %v3859_v25 = vpop.eup %3858 }
 0x6e1   : > { %v3861_v18 = vpop.eup %3860 }
 0x6e2   : > { %2525 = vmatpush.bf16.xpose.msrb.mxu3 %v2479_v61  ;;  %v2478_v11 = vpack.c.bf16 %v3859_v25, %v3861_v18  ;;  %v3863_v38 = vpop.eup %3862 }
 0x6e3   : > { %v3865_v46 = vpop.eup %3864  ;;  %v2495_v37 = vpop.f32.mrf.mxu2 }
 0x6e4   : > { %v2477_v36 = vpack.c.bf16 %v3863_v38, %v3865_v46  ;;  %v2508_v55 = vpop.f32.mrf.mxu3 }
 0x6ea   : > { %2526 = vmatpush.bf16.xpose.msrb.mxu3 %v2478_v11 }
 0x6eb   : > { %v2497_v15 = vpop.f32.mrf.mxu2 }
 0x6ec   : > { %v2510_v30 = vpop.f32.mrf.mxu3 }
 0x6f2   : > { %2527 = vmatpush.bf16.xpose.msrb.mxu3 %v2477_v36 }
 0x6fa   : > { %2528 = vmatpush.bf16.xpose.msrb.mxu3 %v2476_v23 }
 0x702   : > { %2529 = vmatpush.bf16.xpose.msrb.mxu3 %v2475_v35 }
 0x70a   : > { %2530 = vmatpush.bf16.xpose.msrb.mxu3 %v2474_v54 }
 0x712   : > { %2531 = vmatpush.bf16.xpose.msrb.mxu3 %v2473_v2 }
 0x71a   : > { %2532 = vmatpush.bf16.xpose.msrb.mxu3 %v2472_v9 }
 0x721   : > { %2533 = vmatmul.bf16.vlgmr.msrb.gmra.mxu3 %v2447_v5 }
 0x724   : > { %v2521_v10 = vpop.f32.mrf.mxu2 }
 0x72c   : > { %v2523_v13 = vpop.f32.mrf.mxu2 }
 0x74a   : > { %v2484_v8 = vpop.permute.xlu0 %2483 }
 0x74b   : > { %v2509_v21 = vadd.f32 %v2508_v55, %v2484_v8  ;;  %v2522_v39 = vadd.f32 %v2521_v10, %v2484_v8  ;;  %v2496_v43 = vadd.f32 %v2495_v37, %v2484_v8 }
 0x74d   : > { %v2542_v28 = vrot.slane %v2509_v21, 7  ;;  %v2543_v12 = vrot.slane %v2522_v39, 6 }
 0x74f   : > { %v2546_v31 = vsel %vm2545_vm2, %v2496_v43, %v2542_v28 }
 0x7a4   : > { %v2534_v14 = vpop.f32.mrf.mxu3 }
 0x7a5   : > { %v2535_v17 = vadd.f32 %v2534_v14, %v2484_v8 }
 0x7a7   : > { %v2544_v9 = vrot.slane %v2535_v17, 5 }
 0x7a9   : > { %v2548_v41 = vsel %vm2547_vm3, %v2543_v12, %v2544_v9 }
 0x7aa   : > { %v2550_v47 = vsel %vm2549_vm4, %v2546_v31, %v2548_v41 }
 0x7ab   : > { %2556 = vst.msk [vmem:[%s224_s21] sm:$0xf] %vm2554_vm5, %v2550_v47 }
 0x7ac   : > { %v2536_v2 = vpop.f32.mrf.mxu3 }
 0x7ad PF: > { %s15_s18 = sadd.s32 1, %s3877_s18  }
 0x7ae   : > { %p12_p5 = scmp.ge.s32.totalorder %s15_s18, 4  }
 0x7b0   :  { %14 = sbr.rel (!%p12_p5) target bundleno = 1 (0x1), region = 74 }

</bundles_post_ra>
